<compile_context>
chip_gen: v7x
topology: tpu7x:2x2x1
jax: 0.10.0
libtpu: 0.0.40
codegen_flags: <defaults>
</compile_context>

<pallas_src>
import functools

import jax
import jax.numpy as jnp
from jax import lax
from jax.experimental import pallas as pl
from jax.experimental.pallas import tpu as pltpu


def _basic_blocks_kernel(Rr, count, eps,
                         x_ref, mask_ref, m0_ref, b0_ref,
                         w1_ref, b1_ref, g1_ref, be1_ref,
                         w2_ref, b2_ref, g2_ref, be2_ref,
                         csum_ref, out_ref, ext_ref):
    L = out_ref.shape[1]
    inv_count = 1.0 / count
    mask = mask_ref[...]                       # (Rr, L): 1 on valid (h, w) pixels

    # ---- 1x1 conv (pointwise channel mix); zero the conv padding ring -----
    x0 = (jnp.dot(x_ref[...], m0_ref[...], preferred_element_type=jnp.float32)
          + b0_ref[...]) * mask

    # Stage into the row-halo scratch.  Only the two halo rows are zeroed
    # (once); the interior padding ring is already zero from the mask.
    ext_ref[0:1, :] = jnp.zeros((1, L), jnp.float32)
    ext_ref[1 + Rr:2 + Rr, :] = jnp.zeros((1, L), jnp.float32)
    ext_ref[1:1 + Rr, :] = x0

    def conv3x3_bn_relu(w_ref, b_ref, g_ref, be_ref):
        # im2col over the 3 row shifts only (width taps live inside the
        # block-banded weight) -> one fused K = 3*L MXU matmul.
        patches = jnp.concatenate(
            [ext_ref[kh:kh + Rr, :] for kh in range(3)], axis=-1)   # (Rr, 3L)
        acc = jnp.dot(patches, w_ref[...],
                      preferred_element_type=jnp.float32) + b_ref[...]

        # One-pass BN batch statistics (biased variance) over valid pixels.
        am = acc * mask
        s1 = jnp.sum(am, axis=0, keepdims=True)                     # (1, L)
        s2 = jnp.sum(am * am, axis=0, keepdims=True)                # (1, L)
        mean = jnp.dot(s1, csum_ref[...],
                       preferred_element_type=jnp.float32) * inv_count
        ex2 = jnp.dot(s2, csum_ref[...],
                      preferred_element_type=jnp.float32) * inv_count
        var = ex2 - mean * mean
        scale = g_ref[...] * lax.rsqrt(var + eps)
        shift = be_ref[...] - mean * scale
        return jnp.maximum(acc * scale + shift, 0.0) * mask

    y1 = conv3x3_bn_relu(w1_ref, b1_ref, g1_ref, be1_ref)
    ext_ref[1:1 + Rr, :] = y1                  # halo rows are still zero
    y2 = conv3x3_bn_relu(w2_ref, b2_ref, g2_ref, be2_ref)

    out_ref[...] = x0 + y2                     # residual: conv1x1 out + block2 out


def basic_blocks_forward(x_nchw, params):
    """Pallas implementation of Basic_blocks.forward (training-mode BN)."""
    (w0, b0, w1, b1, g1, be1, w2, b2, g2, be2) = params
    N, Cin, H, W = x_nchw.shape
    Cout = w0.shape[0]
    assert 128 % Cout == 0, "lane packing requires out_channel to divide 128"

    Hp = H + 2
    # width-position groups per row: >= W+2 and G*Cout a multiple of 128
    G = (-(-(W + 2) * Cout // 128)) * (128 // Cout)
    L = G * Cout
    Rr = N * Hp
    f32 = jnp.float32

    # --- pack activations: rows = (n, h_pad), lanes = (w_pad, channel) ------
    x_nhwc = jnp.transpose(x_nchw, (0, 2, 3, 1)).astype(f32)
    xpad = jnp.pad(x_nhwc, ((0, 0), (1, 1), (1, G - W - 1), (0, 0)))
    xpacked = xpad.reshape(Rr, G * Cin)

    mrow = jnp.zeros((Hp, G), f32).at[1:H + 1, 1:W + 1].set(1.0)
    mask = jnp.broadcast_to(jnp.repeat(mrow, Cout, axis=1)[None, :, :],
                            (N, Hp, L)).reshape(Rr, L)

    # --- pack weights -------------------------------------------------------
    eyeG = jnp.eye(G, dtype=f32)
    # 1x1 conv: block-diagonal (G*Cin, G*Cout)
    m0 = jnp.kron(eyeG, jnp.transpose(w0[:, :, 0, 0]).astype(f32))

    def pack_conv3x3(w):  # torch OIHW (Cout, Cin, 3, 3) -> (3*L, L) block-banded
        blocks = []
        for kh in range(3):
            m = jnp.zeros((L, L), f32)
            for kw in range(3):
                band = jnp.eye(G, k=1 - kw, dtype=f32)
                m = m + jnp.kron(band, jnp.transpose(w[:, :, kh, kw]).astype(f32))
            blocks.append(m)
        return jnp.concatenate(blocks, axis=0)

    w1p, w2p = pack_conv3x3(w1), pack_conv3x3(w2)
    # per-channel sum+broadcast matrix for BN statistics
    csum = jnp.kron(jnp.ones((G, G), f32), jnp.eye(Cout, dtype=f32))

    def vec(v):  # (Cout,) -> (1, L) tiled per width group
        return jnp.tile(v.astype(f32), G).reshape(1, L)

    kernel = functools.partial(_basic_blocks_kernel, Rr, float(N * H * W), 1e-5)
    vmem = pl.BlockSpec(memory_space=pltpu.MemorySpace.VMEM)
    out_flat = pl.pallas_call(
        kernel,
        out_shape=jax.ShapeDtypeStruct((Rr, L), f32),
        in_specs=[vmem] * 13,
        out_specs=vmem,
        scratch_shapes=[pltpu.VMEM((Rr + 2, L), f32)],
    )(xpacked, mask, m0, vec(b0), w1p, vec(b1), vec(g1), vec(be1),
      w2p, vec(b2), vec(g2), vec(be2), csum)

    out = out_flat.reshape(N, Hp, G, Cout)[:, 1:H + 1, 1:W + 1, :]
    return jnp.transpose(out, (0, 3, 1, 2))    # NCHW (N, Cout, H, W)


def basic_blocks_ref(x, params):
    """Pure-JAX reference matching the PyTorch forward in training mode."""
    (w0, b0, w1, b1, g1, be1, w2, b2, g2, be2) = params
    dn = ('NCHW', 'OIHW', 'NCHW')

    def conv(z, w, b, pad):
        return lax.conv_general_dilated(
            z, w, (1, 1), ((pad, pad), (pad, pad)),
            dimension_numbers=dn) + b[None, :, None, None]

    def bn_relu(y, g, be):
        m = jnp.mean(y, axis=(0, 2, 3), keepdims=True)
        v = jnp.mean((y - m) ** 2, axis=(0, 2, 3), keepdims=True)
        y = (y - m) * lax.rsqrt(v + 1e-5) * g[None, :, None, None] \
            + be[None, :, None, None]
        return jnp.maximum(y, 0.0)

    x0 = conv(x, w0, b0, 0)
    x1 = bn_relu(conv(x0, w1, b1, 1), g1, be1)
    x2 = bn_relu(conv(x1, w2, b2, 1), g2, be2)
    return x0 + x2


if __name__ == "__main__":
    key = jax.random.PRNGKey(0)
    ks = jax.random.split(key, 11)
    N, Cin, Cout, H, W = 2, 4, 4, 16, 16

    x = jax.random.normal(ks[0], (N, Cin, H, W), jnp.float32)
    w0 = jax.random.normal(ks[1], (Cout, Cin, 1, 1), jnp.float32) * 0.3
    b0 = jax.random.normal(ks[2], (Cout,), jnp.float32) * 0.1
    w1 = jax.random.normal(ks[3], (Cout, Cout, 3, 3), jnp.float32) * 0.2
    b1 = jax.random.normal(ks[4], (Cout,), jnp.float32) * 0.1
    g1 = 1.0 + 0.1 * jax.random.normal(ks[5], (Cout,), jnp.float32)
    be1 = 0.1 * jax.random.normal(ks[6], (Cout,), jnp.float32)
    w2 = jax.random.normal(ks[7], (Cout, Cout, 3, 3), jnp.float32) * 0.2
    b2 = jax.random.normal(ks[8], (Cout,), jnp.float32) * 0.1
    g2 = 1.0 + 0.1 * jax.random.normal(ks[9], (Cout,), jnp.float32)
    be2 = 0.1 * jax.random.normal(ks[10], (Cout,), jnp.float32)
    params = (w0, b0, w1, b1, g1, be1, w2, b2, g2, be2)

    out = jax.block_until_ready(basic_blocks_forward(x, params))
    ref = jax.block_until_ready(basic_blocks_ref(x, params))

    assert out.shape == (N, Cout, H, W), out.shape
    max_err = float(jnp.max(jnp.abs(out - ref)))
    assert jnp.allclose(out, ref, rtol=1e-2, atol=1e-2), max_err
    print("KERNEL_OK")
</pallas_src>

<mosaic_0001>
module attributes {stable_mosaic.version = 11 : i64} {
  func.func @_basic_blocks_kernel(%arg0: memref<36x128xf32, #tpu.memory_space<vmem>>, %arg1: memref<36x128xf32, #tpu.memory_space<vmem>>, %arg2: memref<128x128xf32, #tpu.memory_space<vmem>>, %arg3: memref<1x128xf32, #tpu.memory_space<vmem>>, %arg4: memref<384x128xf32, #tpu.memory_space<vmem>>, %arg5: memref<1x128xf32, #tpu.memory_space<vmem>>, %arg6: memref<1x128xf32, #tpu.memory_space<vmem>>, %arg7: memref<1x128xf32, #tpu.memory_space<vmem>>, %arg8: memref<384x128xf32, #tpu.memory_space<vmem>>, %arg9: memref<1x128xf32, #tpu.memory_space<vmem>>, %arg10: memref<1x128xf32, #tpu.memory_space<vmem>>, %arg11: memref<1x128xf32, #tpu.memory_space<vmem>>, %arg12: memref<128x128xf32, #tpu.memory_space<vmem>>, %arg13: memref<36x128xf32, #tpu.memory_space<vmem>>, %arg14: memref<38x128xf32, #tpu.memory_space<vmem>>) attributes {dimension_semantics = [], scalar_prefetch = 0 : i64, scratch_operands = 1 : i64, tpu.core_type = #tpu.core_type<tc>} {
    %c0 = arith.constant 0 : index
    %c0_0 = arith.constant 0 : index
    %0 = vector.load %arg1[%c0, %c0_0] : memref<36x128xf32, #tpu.memory_space<vmem>>, vector<36x128xf32>
    %c0_1 = arith.constant 0 : index
    %c0_2 = arith.constant 0 : index
    %1 = vector.load %arg0[%c0_1, %c0_2] : memref<36x128xf32, #tpu.memory_space<vmem>>, vector<36x128xf32>
    %c0_3 = arith.constant 0 : index
    %c0_4 = arith.constant 0 : index
    %2 = vector.load %arg2[%c0_3, %c0_4] : memref<128x128xf32, #tpu.memory_space<vmem>>, vector<128x128xf32>
    %cst = arith.constant dense<0.000000e+00> : vector<36x128xf32>
    %3 = tpu.matmul %1, %2, %cst {dimension_numbers = #tpu.dot_dimension_numbers<[1], [0], [0], [1], [0, 0, 1, 1], [], []>} : vector<36x128xf32>, vector<128x128xf32>, vector<36x128xf32> -> vector<36x128xf32>
    %c0_5 = arith.constant 0 : index
    %c0_6 = arith.constant 0 : index
    %4 = vector.load %arg3[%c0_5, %c0_6] : memref<1x128xf32, #tpu.memory_space<vmem>>, vector<1x128xf32>
    %5 = vector.broadcast %4 : vector<1x128xf32> to vector<36x128xf32>
    %6 = arith.addf %3, %5 : vector<36x128xf32>
    %7 = arith.mulf %6, %0 : vector<36x128xf32>
    %cst_7 = arith.constant 0.000000e+00 : f32
    %8 = vector.broadcast %cst_7 : f32 to vector<1x128xf32>
    %c0_8 = arith.constant 0 : index
    %c0_9 = arith.constant 0 : index
    %9 = vector.load %arg14[%c0_8, %c0_9] : memref<38x128xf32, #tpu.memory_space<vmem>>, vector<1x128xf32>
    tpu.vector_store %arg14[%c0_8, %c0_9], %8 {strides = array<i32>} : memref<38x128xf32, #tpu.memory_space<vmem>>, vector<1x128xf32>,
    %cst_10 = arith.constant 0.000000e+00 : f32
    %10 = vector.broadcast %cst_10 : f32 to vector<1x128xf32>
    %c37 = arith.constant 37 : index
    %c0_11 = arith.constant 0 : index
    %11 = vector.load %arg14[%c37, %c0_11] : memref<38x128xf32, #tpu.memory_space<vmem>>, vector<1x128xf32>
    tpu.vector_store %arg14[%c37, %c0_11], %10 {strides = array<i32>} : memref<38x128xf32, #tpu.memory_space<vmem>>, vector<1x128xf32>,
    %c1 = arith.constant 1 : index
    %c0_12 = arith.constant 0 : index
    %12 = vector.load %arg14[%c1, %c0_12] : memref<38x128xf32, #tpu.memory_space<vmem>>, vector<36x128xf32>
    tpu.vector_store %arg14[%c1, %c0_12], %7 {strides = array<i32>} : memref<38x128xf32, #tpu.memory_space<vmem>>, vector<36x128xf32>,
    %c0_13 = arith.constant 0 : index
    %c0_14 = arith.constant 0 : index
    %13 = vector.load %arg14[%c0_13, %c0_14] : memref<38x128xf32, #tpu.memory_space<vmem>>, vector<36x128xf32>
    %c1_15 = arith.constant 1 : index
    %c0_16 = arith.constant 0 : index
    %14 = vector.load %arg14[%c1_15, %c0_16] : memref<38x128xf32, #tpu.memory_space<vmem>>, vector<36x128xf32>
    %c2 = arith.constant 2 : index
    %c0_17 = arith.constant 0 : index
    %15 = vector.load %arg14[%c2, %c0_17] : memref<38x128xf32, #tpu.memory_space<vmem>>, vector<36x128xf32>
    %16 = tpu.concatenate %13, %14, %15 in 1 : vector<36x128xf32>, vector<36x128xf32>, vector<36x128xf32> -> vector<36x384xf32>
    %c0_18 = arith.constant 0 : index
    %c0_19 = arith.constant 0 : index
    %17 = vector.load %arg4[%c0_18, %c0_19] : memref<384x128xf32, #tpu.memory_space<vmem>>, vector<384x128xf32>
    %cst_20 = arith.constant dense<0.000000e+00> : vector<36x128xf32>
    %18 = tpu.matmul %16, %17, %cst_20 {dimension_numbers = #tpu.dot_dimension_numbers<[1], [0], [0], [1], [0, 0, 1, 1], [], []>} : vector<36x384xf32>, vector<384x128xf32>, vector<36x128xf32> -> vector<36x128xf32>
    %c0_21 = arith.constant 0 : index
    %c0_22 = arith.constant 0 : index
    %19 = vector.load %arg5[%c0_21, %c0_22] : memref<1x128xf32, #tpu.memory_space<vmem>>, vector<1x128xf32>
    %20 = vector.broadcast %19 : vector<1x128xf32> to vector<36x128xf32>
    %21 = arith.addf %18, %20 : vector<36x128xf32>
    %22 = arith.mulf %21, %0 : vector<36x128xf32>
    %cst_23 = arith.constant dense<0.000000e+00> : vector<128xf32>
    %23 = vector.multi_reduction <add>, %22, %cst_23 [0] : vector<36x128xf32> to vector<128xf32>
    %24 = vector.shape_cast %23 : vector<128xf32> to vector<1x128xf32>
    %25 = arith.mulf %22, %22 : vector<36x128xf32>
    %cst_24 = arith.constant dense<0.000000e+00> : vector<128xf32>
    %26 = vector.multi_reduction <add>, %25, %cst_24 [0] : vector<36x128xf32> to vector<128xf32>
    %27 = vector.shape_cast %26 : vector<128xf32> to vector<1x128xf32>
    %c0_25 = arith.constant 0 : index
    %c0_26 = arith.constant 0 : index
    %28 = vector.load %arg12[%c0_25, %c0_26] : memref<128x128xf32, #tpu.memory_space<vmem>>, vector<128x128xf32>
    %cst_27 = arith.constant dense<0.000000e+00> : vector<1x128xf32>
    %29 = tpu.matmul %24, %28, %cst_27 {dimension_numbers = #tpu.dot_dimension_numbers<[1], [0], [0], [1], [0, 0, 1, 1], [], []>} : vector<1x128xf32>, vector<128x128xf32>, vector<1x128xf32> -> vector<1x128xf32>
    %cst_28 = arith.constant 0.001953125 : f32
    %30 = vector.broadcast %cst_28 : f32 to vector<1x128xf32>
    %31 = arith.mulf %29, %30 : vector<1x128xf32>
    %c0_29 = arith.constant 0 : index
    %c0_30 = arith.constant 0 : index
    %32 = vector.load %arg12[%c0_29, %c0_30] : memref<128x128xf32, #tpu.memory_space<vmem>>, vector<128x128xf32>
    %cst_31 = arith.constant dense<0.000000e+00> : vector<1x128xf32>
    %33 = tpu.matmul %27, %32, %cst_31 {dimension_numbers = #tpu.dot_dimension_numbers<[1], [0], [0], [1], [0, 0, 1, 1], [], []>} : vector<1x128xf32>, vector<128x128xf32>, vector<1x128xf32> -> vector<1x128xf32>
    %cst_32 = arith.constant 0.001953125 : f32
    %34 = vector.broadcast %cst_32 : f32 to vector<1x128xf32>
    %35 = arith.mulf %33, %34 : vector<1x128xf32>
    %36 = arith.mulf %31, %31 : vector<1x128xf32>
    %37 = arith.subf %35, %36 : vector<1x128xf32>
    %c0_33 = arith.constant 0 : index
    %c0_34 = arith.constant 0 : index
    %38 = vector.load %arg6[%c0_33, %c0_34] : memref<1x128xf32, #tpu.memory_space<vmem>>, vector<1x128xf32>
    %cst_35 = arith.constant 9.99999974E-6 : f32
    %39 = vector.broadcast %cst_35 : f32 to vector<1x128xf32>
    %40 = arith.addf %37, %39 : vector<1x128xf32>
    %41 = math.rsqrt %40 : vector<1x128xf32>
    %42 = arith.mulf %38, %41 : vector<1x128xf32>
    %c0_36 = arith.constant 0 : index
    %c0_37 = arith.constant 0 : index
    %43 = vector.load %arg7[%c0_36, %c0_37] : memref<1x128xf32, #tpu.memory_space<vmem>>, vector<1x128xf32>
    %44 = arith.mulf %31, %42 : vector<1x128xf32>
    %45 = arith.subf %43, %44 : vector<1x128xf32>
    %46 = vector.broadcast %42 : vector<1x128xf32> to vector<36x128xf32>
    %47 = arith.mulf %21, %46 : vector<36x128xf32>
    %48 = vector.broadcast %45 : vector<1x128xf32> to vector<36x128xf32>
    %49 = arith.addf %47, %48 : vector<36x128xf32>
    %cst_38 = arith.constant 0.000000e+00 : f32
    %50 = vector.broadcast %cst_38 : f32 to vector<36x128xf32>
    %51 = arith.maximumf %49, %50 : vector<36x128xf32>
    %52 = arith.mulf %51, %0 : vector<36x128xf32>
    %c1_39 = arith.constant 1 : index
    %c0_40 = arith.constant 0 : index
    %53 = vector.load %arg14[%c1_39, %c0_40] : memref<38x128xf32, #tpu.memory_space<vmem>>, vector<36x128xf32>
    tpu.vector_store %arg14[%c1_39, %c0_40], %52 {strides = array<i32>} : memref<38x128xf32, #tpu.memory_space<vmem>>, vector<36x128xf32>,
    %c0_41 = arith.constant 0 : index
    %c0_42 = arith.constant 0 : index
    %54 = vector.load %arg14[%c0_41, %c0_42] : memref<38x128xf32, #tpu.memory_space<vmem>>, vector<36x128xf32>
    %c1_43 = arith.constant 1 : index
    %c0_44 = arith.constant 0 : index
    %55 = vector.load %arg14[%c1_43, %c0_44] : memref<38x128xf32, #tpu.memory_space<vmem>>, vector<36x128xf32>
    %c2_45 = arith.constant 2 : index
    %c0_46 = arith.constant 0 : index
    %56 = vector.load %arg14[%c2_45, %c0_46] : memref<38x128xf32, #tpu.memory_space<vmem>>, vector<36x128xf32>
    %57 = tpu.concatenate %54, %55, %56 in 1 : vector<36x128xf32>, vector<36x128xf32>, vector<36x128xf32> -> vector<36x384xf32>
    %c0_47 = arith.constant 0 : index
    %c0_48 = arith.constant 0 : index
    %58 = vector.load %arg8[%c0_47, %c0_48] : memref<384x128xf32, #tpu.memory_space<vmem>>, vector<384x128xf32>
    %cst_49 = arith.constant dense<0.000000e+00> : vector<36x128xf32>
    %59 = tpu.matmul %57, %58, %cst_49 {dimension_numbers = #tpu.dot_dimension_numbers<[1], [0], [0], [1], [0, 0, 1, 1], [], []>} : vector<36x384xf32>, vector<384x128xf32>, vector<36x128xf32> -> vector<36x128xf32>
    %c0_50 = arith.constant 0 : index
    %c0_51 = arith.constant 0 : index
    %60 = vector.load %arg9[%c0_50, %c0_51] : memref<1x128xf32, #tpu.memory_space<vmem>>, vector<1x128xf32>
    %61 = vector.broadcast %60 : vector<1x128xf32> to vector<36x128xf32>
    %62 = arith.addf %59, %61 : vector<36x128xf32>
    %63 = arith.mulf %62, %0 : vector<36x128xf32>
    %cst_52 = arith.constant dense<0.000000e+00> : vector<128xf32>
    %64 = vector.multi_reduction <add>, %63, %cst_52 [0] : vector<36x128xf32> to vector<128xf32>
    %65 = vector.shape_cast %64 : vector<128xf32> to vector<1x128xf32>
    %66 = arith.mulf %63, %63 : vector<36x128xf32>
    %cst_53 = arith.constant dense<0.000000e+00> : vector<128xf32>
    %67 = vector.multi_reduction <add>, %66, %cst_53 [0] : vector<36x128xf32> to vector<128xf32>
    %68 = vector.shape_cast %67 : vector<128xf32> to vector<1x128xf32>
    %c0_54 = arith.constant 0 : index
    %c0_55 = arith.constant 0 : index
    %69 = vector.load %arg12[%c0_54, %c0_55] : memref<128x128xf32, #tpu.memory_space<vmem>>, vector<128x128xf32>
    %cst_56 = arith.constant dense<0.000000e+00> : vector<1x128xf32>
    %70 = tpu.matmul %65, %69, %cst_56 {dimension_numbers = #tpu.dot_dimension_numbers<[1], [0], [0], [1], [0, 0, 1, 1], [], []>} : vector<1x128xf32>, vector<128x128xf32>, vector<1x128xf32> -> vector<1x128xf32>
    %cst_57 = arith.constant 0.001953125 : f32
    %71 = vector.broadcast %cst_57 : f32 to vector<1x128xf32>
    %72 = arith.mulf %70, %71 : vector<1x128xf32>
    %c0_58 = arith.constant 0 : index
    %c0_59 = arith.constant 0 : index
    %73 = vector.load %arg12[%c0_58, %c0_59] : memref<128x128xf32, #tpu.memory_space<vmem>>, vector<128x128xf32>
    %cst_60 = arith.constant dense<0.000000e+00> : vector<1x128xf32>
    %74 = tpu.matmul %68, %73, %cst_60 {dimension_numbers = #tpu.dot_dimension_numbers<[1], [0], [0], [1], [0, 0, 1, 1], [], []>} : vector<1x128xf32>, vector<128x128xf32>, vector<1x128xf32> -> vector<1x128xf32>
    %cst_61 = arith.constant 0.001953125 : f32
    %75 = vector.broadcast %cst_61 : f32 to vector<1x128xf32>
    %76 = arith.mulf %74, %75 : vector<1x128xf32>
    %77 = arith.mulf %72, %72 : vector<1x128xf32>
    %78 = arith.subf %76, %77 : vector<1x128xf32>
    %c0_62 = arith.constant 0 : index
    %c0_63 = arith.constant 0 : index
    %79 = vector.load %arg10[%c0_62, %c0_63] : memref<1x128xf32, #tpu.memory_space<vmem>>, vector<1x128xf32>
    %cst_64 = arith.constant 9.99999974E-6 : f32
    %80 = vector.broadcast %cst_64 : f32 to vector<1x128xf32>
    %81 = arith.addf %78, %80 : vector<1x128xf32>
    %82 = math.rsqrt %81 : vector<1x128xf32>
    %83 = arith.mulf %79, %82 : vector<1x128xf32>
    %c0_65 = arith.constant 0 : index
    %c0_66 = arith.constant 0 : index
    %84 = vector.load %arg11[%c0_65, %c0_66] : memref<1x128xf32, #tpu.memory_space<vmem>>, vector<1x128xf32>
    %85 = arith.mulf %72, %83 : vector<1x128xf32>
    %86 = arith.subf %84, %85 : vector<1x128xf32>
    %87 = vector.broadcast %83 : vector<1x128xf32> to vector<36x128xf32>
    %88 = arith.mulf %62, %87 : vector<36x128xf32>
    %89 = vector.broadcast %86 : vector<1x128xf32> to vector<36x128xf32>
    %90 = arith.addf %88, %89 : vector<36x128xf32>
    %cst_67 = arith.constant 0.000000e+00 : f32
    %91 = vector.broadcast %cst_67 : f32 to vector<36x128xf32>
    %92 = arith.maximumf %90, %91 : vector<36x128xf32>
    %93 = arith.mulf %92, %0 : vector<36x128xf32>
    %94 = arith.addf %7, %93 : vector<36x128xf32>
    %c0_68 = arith.constant 0 : index
    %c0_69 = arith.constant 0 : index
    %95 = vector.load %arg13[%c0_68, %c0_69] : memref<36x128xf32, #tpu.memory_space<vmem>>, vector<36x128xf32>
    tpu.vector_store %arg13[%c0_68, %c0_69], %94 {strides = array<i32>} : memref<36x128xf32, #tpu.memory_space<vmem>>, vector<36x128xf32>,
    return
  }
}

</mosaic_0001>

<bundles_post_ra>
// kernel: tpu_custom_call.1
= control target key start
LH: loop header
LB: loop body
LE: loop exit
PB: predicated region body
PF: predicated region fallthrough
CT: control target
= control target key end

     0   :  { %18 = vsyncpa [#allocation4], 0  ;;  %s2655_s0 = inlined_call_operand.hbm [shape: f32[36,128], index: 0, kind: input, shape index: {}]   ;;  %s2656_s1 = inlined_call_operand.hbm [shape: f32[36,128], index: 1, kind: input, shape index: {}]   ;;  %s2657_s2 = inlined_call_operand.hbm [shape: f32[128,128], index: 2, kind: input, shape index: {}]   ;;  %s2658_s3 = inlined_call_operand.vmem [shape: f32[1,128], index: 3, kind: input, shape index: {}]   ;;  %s2659_s4 = inlined_call_operand.hbm [shape: f32[384,128], index: 4, kind: input, shape index: {}]   ;;  %s2660_s5 = inlined_call_operand.vmem [shape: f32[1,128], index: 5, kind: input, shape index: {}]   ;;  %s2661_s6 = inlined_call_operand.vmem [shape: f32[1,128], index: 6, kind: input, shape index: {}]   ;;  %s2662_s7 = inlined_call_operand.vmem [shape: f32[1,128], index: 7, kind: input, shape index: {}]   ;;  %s2663_s8 = inlined_call_operand.hbm [shape: f32[384,128], index: 8, kind: input, shape index: {}]   ;;  %s2664_s9 = inlined_call_operand.vmem [shape: f32[1,128], index: 9, kind: input, shape index: {}]   ;;  %s2665_s10 = inlined_call_operand.vmem [shape: f32[1,128], index: 10, kind: input, shape index: {}]   ;;  %s2666_s11 = inlined_call_operand.vmem [shape: f32[1,128], index: 11, kind: input, shape index: {}]   ;;  %s2667_s12 = inlined_call_operand.hbm [shape: f32[128,128], index: 12, kind: input, shape index: {}]   ;;  %s2668_s13 = inlined_call_operand.hbm [shape: f32[36,128], index: 13, kind: output, shape index: {}]  }
   0x1   :  { %19 = vsyncpa [#allocation7], 0 }
   0x2   :  { %20 = vsyncpa [#allocation10], 0 }
   0x3   :  { %21 = vsyncpa [#allocation13], 0 }
   0x4   :  { %22 = vsyncpa [#allocation5], 0  ;;  %s2181_s25 = smov [#allocation6]   ;;  %s2182_s27 = smov [#allocation9]  }
   0x5   :  { %s40_s26 = sshll.u32 %s2181_s25, 4  ;;  %s66_s28 = sshll.u32 %s2182_s27, 4  ;;  %s41_s26 = int_to_ptr.vmem [resolvable:$true] %s40_s26  ;;  %s2263_s28 = int_to_ptr.vmem [resolvable:$true] %s66_s28 }
   0x6   :  { %s2017_s14 = scalar_lea.hbm %s2656_s1, 640 }
   0x7   :  { %p2018_p0 = scmp.ne.s32.totalorder %s2656_s1, %s2017_s14  ;;  %p2021_p1 = scmp.lt.u32.totalorder %s2017_s14, %s2656_s1 }
   0x9   :  { %p2023_p2 = pnand %p2021_p1, %p2018_p0 }
   0xb   :  { %2026 = shalt.err (!%p2023_p2)
}
   0xc   :  { %s2027_s19 = scalar_lea.vmem %s41_s26, 640  ;;  %p2032_p4 = scmp.lt.s32.totalorder %s41_s26, %s41_s26 }
   0xd   :  { %p2028_p3 = scmp.ne.s32.totalorder %s41_s26, %s2027_s19  ;;  %p2033_p5 = scmp.lt.s32.totalorder %s2027_s19, %s2027_s19 }
   0xf   :  { %p2034_p6 = por %p2033_p5, %p2032_p4 }
  0x11   :  { %p2035_p7 = pnand %p2034_p6, %p2028_p3 }
  0x13   :  { %2038 = shalt.err (!%p2035_p7)
}
  0x14   :  { %s2183_s20 = smov 128   ;;  %s2184_s21 = smov 8  }
  0x15   :  { %46 = dma.hbm_to_vmem [thread:$0]  %s2656_s1, 640, %s41_s26, [#allocation7], %s2183_s20, %s2183_s20, %s2184_s21  }
  0x16   :  { %s2039_s27 = scalar_lea.hbm %s2659_s4, 6144 }
  0x17   :  { %p2040_p8 = scmp.ne.s32.totalorder %s2659_s4, %s2039_s27  ;;  %p2043_p9 = scmp.lt.u32.totalorder %s2039_s27, %s2659_s4 }
  0x19   :  { %p2045_p10 = pnand %p2043_p9, %p2040_p8 }
  0x1b   :  { %2048 = shalt.err (!%p2045_p10)
}
  0x1c   :  { %s2049_s16 = scalar_lea.vmem %s2263_s28, 6144  ;;  %p2054_p12 = scmp.lt.s32.totalorder %s2263_s28, %s2263_s28 }
  0x1d   :  { %p2050_p11 = scmp.ne.s32.totalorder %s2263_s28, %s2049_s16  ;;  %p2055_p13 = scmp.lt.s32.totalorder %s2049_s16, %s2049_s16 }
  0x1f   :  { %p2056_p0 = por %p2055_p13, %p2054_p12 }
  0x21   :  { %p2057_p1 = pnand %p2056_p0, %p2050_p11 }
  0x23   :  { %2060 = shalt.err (!%p2057_p1)
}
  0x24   :  { %72 = dma.hbm_to_vmem [thread:$0]  %s2659_s4, 6144, %s2263_s28, [#allocation10], %s2183_s20, %s2183_s20, %s2184_s21  }
  0x25   :  { %s2185_s17 = smov [#allocation3]   ;;  %s2186_s19 = smov [#allocation8]  }
  0x26   :  { %s28_s18 = sshll.u32 %s2185_s17, 4  ;;  %s52_s22 = sshll.u32 %s2186_s19, 4  ;;  %s29_s18 = int_to_ptr.vmem [resolvable:$true] %s28_s18  ;;  %s2300_s22 = int_to_ptr.vmem [resolvable:$true] %s52_s22 }
  0x27   :  { %s2061_s25 = scalar_lea.hbm %s2655_s0, 640 }
  0x28   :  { %p2062_p2 = scmp.ne.s32.totalorder %s2655_s0, %s2061_s25  ;;  %p2065_p3 = scmp.lt.u32.totalorder %s2061_s25, %s2655_s0 }
  0x2a   :  { %p2067_p4 = pnand %p2065_p3, %p2062_p2 }
  0x2c   :  { %2070 = shalt.err (!%p2067_p4)
}
  0x2d   :  { %s2071_s4 = scalar_lea.vmem %s29_s18, 640  ;;  %p2076_p6 = scmp.lt.s32.totalorder %s29_s18, %s29_s18 }
  0x2e   :  { %p2072_p5 = scmp.ne.s32.totalorder %s29_s18, %s2071_s4  ;;  %p2077_p7 = scmp.lt.s32.totalorder %s2071_s4, %s2071_s4 }
  0x30   :  { %p2078_p8 = por %p2077_p7, %p2076_p6 }
  0x32   :  { %p2079_p9 = pnand %p2078_p8, %p2072_p5 }
  0x34   :  { %2082 = shalt.err (!%p2079_p9)
}
  0x35   :  { %34 = dma.hbm_to_vmem [thread:$0]  %s2655_s0, 640, %s29_s18, [#allocation4], %s2183_s20, %s2183_s20, %s2184_s21  }
  0x36   :  { %s2083_s26 = scalar_lea.hbm %s2657_s2, 2048 }
  0x37   :  { %p2084_p10 = scmp.ne.s32.totalorder %s2657_s2, %s2083_s26  ;;  %p2087_p11 = scmp.lt.u32.totalorder %s2083_s26, %s2657_s2 }
  0x39   :  { %p2089_p12 = pnand %p2087_p11, %p2084_p10 }
  0x3b   :  { %2092 = shalt.err (!%p2089_p12)
}
  0x3c   :  { %s2093_s25 = scalar_lea.vmem %s2300_s22, 2048  ;;  %p2098_p0 = scmp.lt.s32.totalorder %s2300_s22, %s2300_s22 }
  0x3d   :  { %p2094_p13 = scmp.ne.s32.totalorder %s2300_s22, %s2093_s25  ;;  %p2099_p1 = scmp.lt.s32.totalorder %s2093_s25, %s2093_s25 }
  0x3f   :  { %p2100_p2 = por %p2099_p1, %p2098_p0 }
  0x41   :  { %p2101_p3 = pnand %p2100_p2, %p2094_p13 }
  0x43   :  { %2104 = shalt.err (!%p2101_p3)
}
  0x44   :  { %58 = dma.hbm_to_vmem [thread:$0]  %s2657_s2, 2048, %s2300_s22, [#allocation7], %s2183_s20, %s2183_s20, %s2184_s21  }
  0x45   :  { %s2187_s27 = smov [#allocation11]   ;;  %s2188_s30 = smov [#allocation12]  }
  0x46   :  { %s84_s29 = sshll.u32 %s2187_s27, 4  ;;  %s102_s14 = sshll.u32 %s2188_s30, 4  ;;  %s85_s29 = int_to_ptr.vmem [resolvable:$true] %s84_s29  ;;  %s2337_s14 = int_to_ptr.vmem [resolvable:$true] %s102_s14 }
  0x47   :  { %s2105_s15 = scalar_lea.hbm %s2663_s8, 6144 }
  0x48   :  { %p2106_p4 = scmp.ne.s32.totalorder %s2663_s8, %s2105_s15  ;;  %p2109_p5 = scmp.lt.u32.totalorder %s2105_s15, %s2663_s8 }
  0x4a   :  { %p2111_p6 = pnand %p2109_p5, %p2106_p4 }
  0x4c   :  { %2114 = shalt.err (!%p2111_p6)
}
  0x4d   :  { %s2115_s2 = scalar_lea.vmem %s85_s29, 6144  ;;  %p2120_p8 = scmp.lt.s32.totalorder %s85_s29, %s85_s29 }
  0x4e   :  { %p2116_p7 = scmp.ne.s32.totalorder %s85_s29, %s2115_s2  ;;  %p2121_p9 = scmp.lt.s32.totalorder %s2115_s2, %s2115_s2 }
  0x50   :  { %p2122_p10 = por %p2121_p9, %p2120_p8 }
  0x52   :  { %p2123_p11 = pnand %p2122_p10, %p2116_p7 }
  0x54   :  { %2126 = shalt.err (!%p2123_p11)
}
  0x55   :  { %90 = dma.hbm_to_vmem [thread:$0]  %s2663_s8, 6144, %s85_s29, [#allocation10], %s2183_s20, %s2183_s20, %s2184_s21  }
  0x56   :  { %s2127_s25 = scalar_lea.hbm %s2667_s12, 2048 }
  0x57   :  { %p2128_p12 = scmp.ne.s32.totalorder %s2667_s12, %s2127_s25  ;;  %p2131_p13 = scmp.lt.u32.totalorder %s2127_s25, %s2667_s12 }
  0x59   :  { %p2133_p0 = pnand %p2131_p13, %p2128_p12 }
  0x5b   :  { %2136 = shalt.err (!%p2133_p0)
}
  0x5c   :  { %s2137_s4 = scalar_lea.vmem %s2337_s14, 2048  ;;  %p2142_p2 = scmp.lt.s32.totalorder %s2337_s14, %s2337_s14 }
  0x5d   :  { %p2138_p1 = scmp.ne.s32.totalorder %s2337_s14, %s2137_s4  ;;  %p2143_p3 = scmp.lt.s32.totalorder %s2137_s4, %s2137_s4 }
  0x5f   :  { %p2144_p4 = por %p2143_p3, %p2142_p2 }
  0x61   :  { %p2145_p5 = pnand %p2144_p4, %p2138_p1 }
  0x63   :  { %2148 = shalt.err (!%p2145_p5)
}
  0x64   :  { %108 = dma.hbm_to_vmem [thread:$0]  %s2667_s12, 2048, %s2337_s14, [#allocation13], %s2183_s20, %s2183_s20, %s2184_s21  }
  0x65   :  { %2171 = dma.done.wait [#allocation4], 640  }
  0x66   :  { %2172 = vsyncadd [#allocation4], 4294966656 }
  0x67   :  { %2173 = dma.done.wait [#allocation7], 2688  }
  0x68   :  { %2174 = vsyncadd [#allocation7], 4294964608 }
  0x69   :  { %2175 = dma.done.wait [#allocation10], 12288  }
  0x6a   :  { %2176 = vsyncadd [#allocation10], 4294955008 }
  0x6b   :  { %2177 = dma.done.wait [#allocation13], 2048  }
  0x6c   :  { %2178 = vsyncadd [#allocation13], 4294965248  ;;  %v2189_v0 = vmov 0.0|0.0   ;;  %vm2190_vm0 = vmmov 0   ;;  %v2191_v1 = vmov 0.0   ;;  %v137_v2 = vld [vmem:[#allocation8] sm:$0xff] }
  0x6d   :  { %1769 = vmatprep.subr.bf16.mxu0 %v2189_v0  ;;  %1520 = vmatprep.mubr.msk.f32.mxu0 %vm2190_vm0, %v2191_v1  ;;  %255 = vst [vmem:[#allocation2] sm:$0x1] %v2191_v1  ;;  %256 = vst [vmem:[#allocation2 + $0x25] sm:$0x1] %v2191_v1  ;;  %v138_v3 = vld [vmem:[#allocation8 + $0x8] sm:$0xff]  ;;  %v139_v4 = vld [vmem:[#allocation8 + $0x10] sm:$0xff] }
  0x6e   :  { %v1770_v5 = vpack.c.bf16 %v138_v3, %v137_v2  ;;  %v140_v6 = vld [vmem:[#allocation8 + $0x18] sm:$0xff]  ;;  %v141_v8 = vld [vmem:[#allocation8 + $0x20] sm:$0xff]  ;;  %v142_v9 = vld [vmem:[#allocation8 + $0x28] sm:$0xff]  ;;  %vm520_vm1 = vcmask 1043456  }
  0x6f   :  { %v1773_v7 = vpack.c.bf16 %v140_v6, %v139_v4  ;;  %v143_v10 = vld [vmem:[#allocation8 + $0x30] sm:$0xff]  ;;  %v144_v11 = vld [vmem:[#allocation8 + $0x38] sm:$0xff]  ;;  %v1776_v12 = vpack.c.bf16 %v142_v9, %v141_v8  ;;  %v293_v13 = vld [vmem:[#allocation9 + $0x80] sm:$0xff] }
  0x70   :  { %1771 = vmatpush3.bf16.msra.mxu0 %v1770_v5  ;;  %v294_v14 = vld [vmem:[#allocation9 + $0x88] sm:$0xff]  ;;  %v277_v15 = vld [vmem:[#allocation9] sm:$0xff]  ;;  %v295_v18 = vld [vmem:[#allocation9 + $0x90] sm:$0xff]  ;;  %v1779_v26 = vpack.c.bf16 %v144_v11, %v143_v10 }
  0x71   :  { %1772 = vmatprep.subr.bf16.mxu0 %v2189_v0  ;;  %v1793_v16 = vpack.c.bf16 %v294_v14, %v293_v13  ;;  %v278_v17 = vld [vmem:[#allocation9 + $0x8] sm:$0xff]  ;;  %v296_v19 = vld [vmem:[#allocation9 + $0x98] sm:$0xff]  ;;  %v279_v22 = vld [vmem:[#allocation9 + $0x10] sm:$0xff] }
  0x72   :  { %v1795_v20 = vpack.c.bf16 %v278_v17, %v277_v15  ;;  %v1797_v21 = vpack.c.bf16 %v296_v19, %v295_v18  ;;  %v280_v23 = vld [vmem:[#allocation9 + $0x18] sm:$0xff]  ;;  %v297_v24 = vld [vmem:[#allocation9 + $0xa0] sm:$0xff]  ;;  %v298_v25 = vld [vmem:[#allocation9 + $0xa8] sm:$0xff] }
  0x73   :  { %1794 = vmatprep.subr.bf16.mxu1 %v1793_v16  ;;  %v145_v27 = vld [vmem:[#allocation8 + $0x40] sm:$0xff]  ;;  %v1799_v28 = vpack.c.bf16 %v280_v23, %v279_v22  ;;  %v146_v29 = vld [vmem:[#allocation8 + $0x48] sm:$0xff]  ;;  %v1801_v30 = vpack.c.bf16 %v298_v25, %v297_v24  ;;  %v299_v33 = vld [vmem:[#allocation9 + $0xb0] sm:$0xff] }
  0x74   :  { %1774 = vmatpush3.bf16.msra.mxu0 %v1773_v7  ;;  %1796 = vmatpush3.bf16.msra.mxu1 %v1795_v20  ;;  %v281_v31 = vld [vmem:[#allocation9 + $0x20] sm:$0xff]  ;;  %v282_v32 = vld [vmem:[#allocation9 + $0x28] sm:$0xff]  ;;  %v300_v34 = vld [vmem:[#allocation9 + $0xb8] sm:$0xff]  ;;  %v1782_v35 = vpack.c.bf16 %v146_v29, %v145_v27 }
  0x75   :  { %1775 = vmatprep.subr.bf16.mxu0 %v2189_v0  ;;  %1798 = vmatprep.subr.bf16.mxu1 %v1797_v21  ;;  %v147_v36 = vld [vmem:[#allocation8 + $0x50] sm:$0xff]  ;;  %v1803_v37 = vpack.c.bf16 %v282_v32, %v281_v31  ;;  %v148_v38 = vld [vmem:[#allocation8 + $0x58] sm:$0xff]  ;;  %v1805_v39 = vpack.c.bf16 %v300_v34, %v299_v33  ;;  %v301_v42 = vld [vmem:[#allocation9 + $0xc0] sm:$0xff] }
  0x76   :  { %v283_v40 = vld [vmem:[#allocation9 + $0x30] sm:$0xff]  ;;  %v284_v41 = vld [vmem:[#allocation9 + $0x38] sm:$0xff]  ;;  %v302_v43 = vld [vmem:[#allocation9 + $0xc8] sm:$0xff]  ;;  %v1785_v44 = vpack.c.bf16 %v148_v38, %v147_v36 }
  0x77   :  { %v149_v45 = vld [vmem:[#allocation8 + $0x60] sm:$0xff]  ;;  %v1807_v46 = vpack.c.bf16 %v284_v41, %v283_v40  ;;  %v150_v47 = vld [vmem:[#allocation8 + $0x68] sm:$0xff]  ;;  %v1809_v48 = vpack.c.bf16 %v302_v43, %v301_v42  ;;  %v151_v53 = vld [vmem:[#allocation8 + $0x70] sm:$0xff] }
  0x78   :  { %1777 = vmatpush3.bf16.msra.mxu0 %v1776_v12  ;;  %1800 = vmatpush3.bf16.msra.mxu1 %v1799_v28  ;;  %v285_v49 = vld [vmem:[#allocation9 + $0x40] sm:$0xff]  ;;  %v286_v50 = vld [vmem:[#allocation9 + $0x48] sm:$0xff]  ;;  %v1788_v51 = vpack.c.bf16 %v150_v47, %v149_v45  ;;  %v152_v54 = vld [vmem:[#allocation8 + $0x78] sm:$0xff] }
  0x79   :  { %1778 = vmatprep.subr.bf16.mxu0 %v2189_v0  ;;  %1802 = vmatprep.subr.bf16.mxu1 %v1801_v30  ;;  %v1811_v52 = vpack.c.bf16 %v286_v50, %v285_v49  ;;  %v1791_v55 = vpack.c.bf16 %v152_v54, %v151_v53  ;;  %v309_v56 = vld [vmem:[#allocation9 + $0x100] sm:$0xff]  ;;  %v310_v57 = vld [vmem:[#allocation9 + $0x108] sm:$0xff]  ;;  %v132_v58 = vld [vmem:[#allocation3] sm:$0xff] }
  0x7a   :  { %v1826_v59 = vpack.c.bf16 %v310_v57, %v309_v56  ;;  %v311_v60 = vld [vmem:[#allocation9 + $0x110] sm:$0xff]  ;;  %v312_v61 = vld [vmem:[#allocation9 + $0x118] sm:$0xff]  ;;  %v313_v2 = vld [vmem:[#allocation9 + $0x120] sm:$0xff] }
  0x7b   :  { %v133_v62 = vld [vmem:[#allocation3 + $0x8] sm:$0xff]  ;;  %v1829_v63 = vpack.c.bf16 %v312_v61, %v311_v60  ;;  %v314_v3 = vld [vmem:[#allocation9 + $0x128] sm:$0xff]  ;;  %v134_v4 = vld [vmem:[#allocation3 + $0x10] sm:$0xff] }
  0x7c   :  { %1780 = vmatpush3.bf16.msra.mxu0 %v1779_v26  ;;  %1804 = vmatpush3.bf16.msra.mxu1 %v1803_v37  ;;  %v1832_v5 = vpack.c.bf16 %v314_v3, %v313_v2  ;;  %v315_v6 = vld [vmem:[#allocation9 + $0x130] sm:$0xff]  ;;  %v316_v7 = vld [vmem:[#allocation9 + $0x138] sm:$0xff]  ;;  %v135_v8 = vld [vmem:[#allocation3 + $0x18] sm:$0xff] }
  0x7d   :  { %1781 = vmatprep.subr.bf16.mxu0 %v2189_v0  ;;  %1806 = vmatprep.subr.bf16.mxu1 %v1805_v39  ;;  %v1835_v9 = vpack.c.bf16 %v316_v7, %v315_v6  ;;  %v136_v10 = vld [vmem:[#allocation3 + $0x20] sm:$0xf]  ;;  %v304_v12 = vld [vmem:[#allocation9 + $0xd8] sm:$0xff]  ;;  %v317_v14 = vld [vmem:[#allocation9 + $0x140] sm:$0xff] }
  0x7e   :  { %v303_v11 = vld [vmem:[#allocation9 + $0xd0] sm:$0xff]  ;;  %v318_v15 = vld [vmem:[#allocation9 + $0x148] sm:$0xff]  ;;  %v288_v18 = vld [vmem:[#allocation9 + $0x58] sm:$0xff] }
  0x7f   :  { %v1813_v13 = vpack.c.bf16 %v304_v12, %v303_v11  ;;  %v287_v16 = vld [vmem:[#allocation9 + $0x50] sm:$0xff]  ;;  %v1838_v17 = vpack.c.bf16 %v318_v15, %v317_v14  ;;  %v305_v20 = vld [vmem:[#allocation9 + $0xe0] sm:$0xff]  ;;  %v306_v21 = vld [vmem:[#allocation9 + $0xe8] sm:$0xff] }
  0x80   :  { %1783 = vmatpush3.bf16.msra.mxu0 %v1782_v35  ;;  %1808 = vmatpush3.bf16.msra.mxu1 %v1807_v46  ;;  %v1815_v19 = vpack.c.bf16 %v288_v18, %v287_v16  ;;  %v1817_v22 = vpack.c.bf16 %v306_v21, %v305_v20  ;;  %v319_v23 = vld [vmem:[#allocation9 + $0x150] sm:$0xff]  ;;  %v320_v24 = vld [vmem:[#allocation9 + $0x158] sm:$0xff]  ;;  %v289_v25 = vld [vmem:[#allocation9 + $0x60] sm:$0xff] }
  0x81   :  { %1784 = vmatprep.subr.bf16.mxu0 %v2189_v0  ;;  %1810 = vmatprep.subr.bf16.mxu1 %v1809_v48  ;;  %v1841_v26 = vpack.c.bf16 %v320_v24, %v319_v23  ;;  %v290_v27 = vld [vmem:[#allocation9 + $0x68] sm:$0xff]  ;;  %v307_v29 = vld [vmem:[#allocation9 + $0xf0] sm:$0xff]  ;;  %v308_v30 = vld [vmem:[#allocation9 + $0xf8] sm:$0xff] }
  0x82   :  { %v1819_v28 = vpack.c.bf16 %v290_v27, %v289_v25  ;;  %v1821_v31 = vpack.c.bf16 %v308_v30, %v307_v29  ;;  %v321_v32 = vld [vmem:[#allocation9 + $0x160] sm:$0xff]  ;;  %v322_v33 = vld [vmem:[#allocation9 + $0x168] sm:$0xff]  ;;  %v291_v34 = vld [vmem:[#allocation9 + $0x70] sm:$0xff] }
  0x83   :  { %v1844_v35 = vpack.c.bf16 %v322_v33, %v321_v32  ;;  %v292_v36 = vld [vmem:[#allocation9 + $0x78] sm:$0xff]  ;;  %v323_v38 = vld [vmem:[#allocation9 + $0x170] sm:$0xff]  ;;  %v1260_v41 = vld [vmem:[%s2658_s3] ss:$0 sm:$0xff] }
  0x84   :  { %1786 = vmatpush3.bf16.msra.mxu0 %v1785_v44  ;;  %1812 = vmatpush3.bf16.msra.mxu1 %v1811_v52  ;;  %v1823_v37 = vpack.c.bf16 %v292_v36, %v291_v34  ;;  %v324_v39 = vld [vmem:[#allocation9 + $0x178] sm:$0xff]  ;;  %v2414_v47 = vld [vmem:[#allocation6 + $0x8] sm:$0xff]  ;;  %v2421_v52 = vld [vmem:[#allocation6 + $0x10] sm:$0xff] }
  0x85   :  { %1787 = vmatprep.subr.bf16.mxu0 %v2189_v0  ;;  %1814 = vmatprep.subr.bf16.mxu1 %v1813_v13  ;;  %v1847_v40 = vpack.c.bf16 %v324_v39, %v323_v38  ;;  %v2409_v42 = vld [vmem:[#allocation6] sm:$0xff]  ;;  %v2427_v57 = vld [vmem:[#allocation6 + $0x18] sm:$0xff]  ;;  %v545_v16 = vld [vmem:[#allocation12] sm:$0xff] }
  0x86   :  { %v548_v20 = vld [vmem:[#allocation12 + $0x18] sm:$0xff]  ;;  %v550_v23 = vld [vmem:[#allocation12 + $0x28] sm:$0xff]  ;;  %v551_v25 = vld [vmem:[#allocation12 + $0x30] sm:$0xff] }
  0x87   :  { %v554_v29 = vld [vmem:[#allocation12 + $0x48] sm:$0xff]  ;;  %v556_v32 = vld [vmem:[#allocation12 + $0x58] sm:$0xff]  ;;  %v557_v34 = vld [vmem:[#allocation12 + $0x60] sm:$0xff] }
  0x88   :  { %1789 = vmatpush3.bf16.msra.mxu0 %v1788_v51  ;;  %1816 = vmatpush3.bf16.msra.mxu1 %v1815_v19  ;;  %v547_v19 = vld [vmem:[#allocation12 + $0x10] sm:$0xff]  ;;  %v560_v38 = vld [vmem:[#allocation12 + $0x78] sm:$0xff] }
  0x89   :  { %1790 = vmatprep.subr.bf16.mxu0 %v2189_v0  ;;  %1818 = vmatprep.subr.bf16.mxu1 %v1817_v22  ;;  %v2461_v21 = vpack.c.bf16 %v548_v20, %v547_v19  ;;  %v549_v22 = vld [vmem:[#allocation12 + $0x20] sm:$0xff] }
  0x8a   :  { %v2467_v24 = vpack.c.bf16 %v550_v23, %v549_v22 }
  0x8c   :  { %1792 = vmatpush3.bf16.msra.mxu0 %v1791_v55  ;;  %1820 = vmatpush3.bf16.msra.mxu1 %v1819_v28  ;;  %v553_v28 = vld [vmem:[#allocation12 + $0x40] sm:$0xff] }
  0x8d   :  { %1825 = vmatprep.subr.bf16.mxu0 %v2189_v0  ;;  %1822 = vmatprep.subr.bf16.mxu1 %v1821_v31  ;;  %v2479_v30 = vpack.c.bf16 %v554_v29, %v553_v28  ;;  %v555_v31 = vld [vmem:[#allocation12 + $0x50] sm:$0xff] }
  0x8e   :  { %v2485_v33 = vpack.c.bf16 %v556_v32, %v555_v31 }
  0x8f   :  { %1521 = vmatmul.mubr.f32.vlgmr.msra.gmra.mrb[0].mxu0 %v132_v58 }
  0x90   :  { %1523 = vmatprep.mubr.msk.f32.mxu0 %vm2190_vm0, %v2191_v1  ;;  %1827 = vmatpush3.bf16.msra.mxu0 %v1826_v59 }
  0x91   :  { %1828 = vmatprep.subr.bf16.mxu0 %v2189_v0  ;;  %1824 = vmatpush3.bf16.msra.mxu1 %v1823_v37  ;;  %v559_v37 = vld [vmem:[#allocation12 + $0x70] sm:$0xff] }
  0x92   :  { %1849 = vmatprep.subr.bf16.mxu1 %v2189_v0  ;;  %v2497_v39 = vpack.c.bf16 %v560_v38, %v559_v37 }
  0x93   :  { %1524 = vmatmul.mubr.f32.gmra.mrb[2].mxu0 %v133_v62 }
  0x94   :  { %1526 = vmatprep.mubr.msk.f32.mxu0 %vm2190_vm0, %v2191_v1  ;;  %1830 = vmatpush3.bf16.msra.mxu0 %v1829_v63  ;;  %v2434_v63 = vld [vmem:[#allocation6 + $0x20] sm:$0xf] }
  0x95   :  { %1831 = vmatprep.subr.bf16.mxu0 %v2189_v0 }
  0x97   :  { %1527 = vmatmul.mubr.f32.gmra.mrb[4].mxu0 %v134_v4 }
  0x98   :  { %1529 = vmatprep.mubr.msk.f32.mxu0 %vm2190_vm0, %v2191_v1  ;;  %1833 = vmatpush3.bf16.msra.mxu0 %v1832_v5 }
  0x99   :  { %1834 = vmatprep.subr.bf16.mxu0 %v2189_v0 }
  0x9b   :  { %1530 = vmatmul.mubr.f32.gmra.mrb[6].mxu0 %v135_v8 }
  0x9c   :  { %1532 = vmatprep.mubr.msk.f32.mxu0 %vm2190_vm0, %v2191_v1  ;;  %1836 = vmatpush3.bf16.msra.mxu0 %v1835_v9 }
  0x9d   :  { %1837 = vmatprep.subr.bf16.mxu0 %v2189_v0 }
  0x9f   :  { %1533 = vmatmul.mubr.f32.gmra.mrb[8].mxu0 %v136_v10 }
  0xa0   :  { %1567 = vmatprep.mubr.msk.f32.mxu0 %vm2190_vm0, %v2191_v1  ;;  %1839 = vmatpush3.bf16.msra.mxu0 %v1838_v17  ;;  %v546_v17 = vld [vmem:[#allocation12 + $0x8] sm:$0xff] }
  0xa1   :  { %1840 = vmatprep.subr.bf16.mxu0 %v2189_v0  ;;  %v2455_v18 = vpack.c.bf16 %v546_v17, %v545_v16 }
  0xa4   :  { %1842 = vmatpush3.bf16.msra.mxu0 %v1841_v26  ;;  %v552_v26 = vld [vmem:[#allocation12 + $0x38] sm:$0xff] }
  0xa5   :  { %1843 = vmatprep.subr.bf16.mxu0 %v2189_v0  ;;  %v2473_v27 = vpack.c.bf16 %v552_v26, %v551_v25 }
  0xa8   :  { %1845 = vmatpush3.bf16.msra.mxu0 %v1844_v35  ;;  %v558_v35 = vld [vmem:[#allocation12 + $0x68] sm:$0xff] }
  0xa9   :  { %1846 = vmatprep.subr.bf16.mxu0 %v2189_v0  ;;  %v2491_v36 = vpack.c.bf16 %v558_v35, %v557_v34 }
  0xac   :  { %1848 = vmatpush3.bf16.msra.mxu0 %v1847_v40 }
  0xad   :  { %1873 = vmatprep.subr.bf16.mxu0 %v2189_v0 }
 0x162   :  { %v226_v43 = vpop.f32.mrb[0].mxu0 }
 0x163   :  { %v227_v44 = vadd.f32 %v1260_v41, %v226_v43  ;;  %v1522_v45 = vpop.f32.mrb[1].mxu0  ;;  %v1261_v43 = vld [vmem:[%s2660_s5] ss:$0 sm:$0xff] }
 0x165   :  { %v2412_v46 = vmul.f32 %v227_v44, %v2409_v42 }
 0x166   :  { %v231_v48 = vpop.f32.mrb[2].mxu0 }
 0x167   :  { %257 = vst [vmem:[#allocation2 + $0x1] sm:$0xff] %v2412_v46  ;;  %v232_v49 = vadd.f32 %v1260_v41, %v231_v48  ;;  %v1525_v50 = vpop.f32.mrb[3].mxu0  ;;  %396 = vmatprep.mubr.f32.mxu1 %v2412_v46 }
 0x169   :  { %v2419_v51 = vmul.f32 %v232_v49, %v2414_v47 }
 0x16a   :  { %v236_v53 = vpop.f32.mrb[4].mxu0 }
 0x16b   :  { %258 = vst [vmem:[#allocation2 + $0x9] sm:$0xff] %v2419_v51  ;;  %v237_v54 = vadd.f32 %v1260_v41, %v236_v53  ;;  %v1528_v55 = vpop.f32.mrb[5].mxu0 }
 0x16d   :  { %v2425_v56 = vmul.f32 %v237_v54, %v2421_v52 }
 0x16e   :  { %v241_v58 = vpop.f32.mrb[6].mxu0  ;;  %v262_v59 = vld [vmem:[#allocation2] sm:$0xff] }
 0x16f   :  { %259 = vst [vmem:[#allocation2 + $0x11] sm:$0xff] %v2425_v56  ;;  %v242_v60 = vadd.f32 %v1260_v41, %v241_v58  ;;  %v1531_v61 = vpop.f32.mrb[7].mxu0  ;;  %397 = vmatmul.mubr.f32.vlgmr.msra.gmra.mrb[0].mxu1 %v262_v59 }
 0x170   :  { %401 = vmatprep.mubr.f32.mxu1 %v2419_v51  ;;  %1851 = vmatpush3.bf16.msra.mxu1 %v2455_v18 }
 0x171   :  { %v2432_v62 = vmul.f32 %v242_v60, %v2427_v57  ;;  %1852 = vmatprep.subr.bf16.mxu1 %v2189_v0 }
 0x172   :  { %v246_v2 = vpop.f32.mrb[8].mxu0  ;;  %v272_v3 = vld [vmem:[#allocation2 + $0x2] sm:$0xff] }
 0x173   :  { %v263_v4 = vld [vmem:[#allocation2 + $0x8] sm:$0xff]  ;;  %260 = vst [vmem:[#allocation2 + $0x19] sm:$0xff] %v2432_v62  ;;  %v247_v5 = vadd.f32 %v1260_v41, %v246_v2  ;;  %v1534_v6 = vpop.f32.mrb[9].mxu0  ;;  %1568 = vmatmul.mubr.f32.vlgmr.msra.gmra.mrb[10].mxu0 %v272_v3 }
 0x174   :  { %402 = vmatmul.mubr.f32.gmra.mrb[2].mxu1 %v263_v4  ;;  %1570 = vmatprep.mubr.msk.f32.mxu0 %vm2190_vm0, %v2191_v1 }
 0x175   :  { %406 = vmatprep.mubr.f32.mxu1 %v2425_v56  ;;  %v2441_v7 = vmul.f32 %v247_v5, %v2434_v63  ;;  %1875 = vmatpush3.bf16.msra.mxu0 %v2455_v18 }
 0x176   :  { %v273_v8 = vld [vmem:[#allocation2 + $0xa] sm:$0xff]  ;;  %1876 = vmatprep.subr.bf16.mxu0 %v2189_v0  ;;  %1854 = vmatpush3.bf16.msra.mxu1 %v2461_v21 }
 0x177   :  { %v264_v9 = vld [vmem:[#allocation2 + $0x10] sm:$0xff]  ;;  %261 = vst [vmem:[#allocation2 + $0x21] sm:$0xf] %v2441_v7  ;;  %1571 = vmatmul.mubr.f32.gmra.mrb[12].mxu0 %v273_v8  ;;  %1855 = vmatprep.subr.bf16.mxu1 %v2189_v0 }
 0x178   :  { %407 = vmatmul.mubr.f32.gmra.mrb[4].mxu1 %v264_v9  ;;  %1573 = vmatprep.mubr.msk.f32.mxu0 %vm2190_vm0, %v2191_v1 }
 0x179   :  { %411 = vmatprep.mubr.f32.mxu1 %v2432_v62  ;;  %1878 = vmatpush3.bf16.msra.mxu0 %v2461_v21 }
 0x17a   :  { %v274_v10 = vld [vmem:[#allocation2 + $0x12] sm:$0xff]  ;;  %1879 = vmatprep.subr.bf16.mxu0 %v2189_v0  ;;  %1857 = vmatpush3.bf16.msra.mxu1 %v2467_v24 }
 0x17b   :  { %v265_v11 = vld [vmem:[#allocation2 + $0x18] sm:$0xff]  ;;  %1574 = vmatmul.mubr.f32.gmra.mrb[14].mxu0 %v274_v10  ;;  %1858 = vmatprep.subr.bf16.mxu1 %v2189_v0 }
 0x17c   :  { %412 = vmatmul.mubr.f32.gmra.mrb[6].mxu1 %v265_v11  ;;  %1576 = vmatprep.mubr.msk.f32.mxu0 %vm2190_vm0, %v2191_v1 }
 0x17d   :  { %1881 = vmatpush3.bf16.msra.mxu0 %v2467_v24 }
 0x17e   :  { %v271_v12 = vld [vmem:[#allocation2 + $0x21] sm:$0xf]  ;;  %1882 = vmatprep.subr.bf16.mxu0 %v2189_v0  ;;  %1860 = vmatpush3.bf16.msra.mxu1 %v2473_v27 }
 0x17f   :  { %v275_v13 = vld [vmem:[#allocation2 + $0x1a] sm:$0xff]  ;;  %416 = vmatprep.mubr.f32.mxu1 %v271_v12  ;;  %v276_v15 = vld [vmem:[#allocation2 + $0x22] sm:$0xf]  ;;  %1861 = vmatprep.subr.bf16.mxu1 %v2189_v0 }
 0x180   :  { %v266_v14 = vld [vmem:[#allocation2 + $0x20] sm:$0xf]  ;;  %1577 = vmatmul.mubr.f32.gmra.mrb[16].mxu0 %v275_v13 }
 0x181   :  { %417 = vmatmul.mubr.f32.gmra.mrb[8].mxu1 %v266_v14  ;;  %1579 = vmatprep.mubr.msk.f32.mxu0 %vm2190_vm0, %v2191_v1 }
 0x182   :  { %1614 = vmatprep.mubr.msk.f32.mxu1 %vm2190_vm0, %v2191_v1  ;;  %1884 = vmatpush3.bf16.msra.mxu0 %v2473_v27 }
 0x183   :  { %1885 = vmatprep.subr.bf16.mxu0 %v2189_v0  ;;  %1863 = vmatpush3.bf16.msra.mxu1 %v2479_v30 }
 0x184   :  { %1580 = vmatmul.mubr.f32.gmra.mrb[18].mxu0 %v276_v15  ;;  %1864 = vmatprep.subr.bf16.mxu1 %v2189_v0 }
 0x185   :  { %1649 = vmatprep.mubr.msk.f32.mxu0 %vm2190_vm0, %v2191_v1 }
 0x186   :  { %1887 = vmatpush3.bf16.msra.mxu0 %v2479_v30 }
 0x187   :  { %1888 = vmatprep.subr.bf16.mxu0 %v2189_v0  ;;  %1866 = vmatpush3.bf16.msra.mxu1 %v2485_v33 }
 0x188   :  { %1867 = vmatprep.subr.bf16.mxu1 %v2189_v0 }
 0x18a   :  { %1890 = vmatpush3.bf16.msra.mxu0 %v2485_v33 }
 0x18b   :  { %1891 = vmatprep.subr.bf16.mxu0 %v2189_v0  ;;  %1869 = vmatpush3.bf16.msra.mxu1 %v2491_v36 }
 0x18c   :  { %1870 = vmatprep.subr.bf16.mxu1 %v2189_v0 }
 0x18e   :  { %1893 = vmatpush3.bf16.msra.mxu0 %v2491_v36 }
 0x18f   :  { %1894 = vmatprep.subr.bf16.mxu0 %v2189_v0  ;;  %1872 = vmatpush3.bf16.msra.mxu1 %v2497_v39 }
 0x192   :  { %1896 = vmatpush3.bf16.msra.mxu0 %v2497_v39 }
 0x193   :  { %1929 = vmatprep.subr.bf16.mxu0 %v2189_v0 }
 0x242   :  { %v1316_v40 = vpop.f32.mrb[0].mxu1 }
 0x243   :  { %v1317_v41 = vpop.f32.mrb[1].mxu1 }
 0x244   :  { %v1318_v44 = vadd.f32 %v1317_v41, %v1316_v40 }
 0x246   :  { %v399_v45 = vadd.f32 %v1318_v44, %v1261_v43  ;;  %v488_v48 = vpop.f32.mrb[10].mxu0 }
 0x247   :  { %v1319_v49 = vpop.f32.mrb[2].mxu1  ;;  %v1569_v50 = vpop.f32.mrb[11].mxu0 }
 0x248   :  { %v1320_v53 = vpop.f32.mrb[3].mxu1  ;;  %v2505_v54 = vadd.f32 %v488_v48, %v399_v45 }
 0x249   :  { %v1321_v55 = vadd.f32 %v1320_v53, %v1319_v49 }
 0x24a   :  { %v493_v59 = vpop.f32.mrb[12].mxu0  ;;  %v512_v19 = vmul.f32 %v2505_v54, %v2409_v42 }
 0x24b   :  { %v404_v58 = vadd.f32 %v1321_v55, %v1261_v43  ;;  %v1322_v60 = vpop.f32.mrb[4].mxu1  ;;  %v1572_v61 = vpop.f32.mrb[13].mxu0 }
 0x24c   :  { %v1323_v2 = vpop.f32.mrb[5].mxu1  ;;  %v529_v34 = vmul.f32 %v512_v19, %v512_v19 }
 0x24d   :  { %v2507_v3 = vadd.f32 %v493_v59, %v404_v58  ;;  %v1324_v4 = vadd.f32 %v1323_v2, %v1322_v60 }
 0x24e   :  { %v498_v6 = vpop.f32.mrb[14].mxu0 }
 0x24f   :  { %v409_v5 = vadd.f32 %v1324_v4, %v1261_v43  ;;  %v1325_v8 = vpop.f32.mrb[6].mxu1  ;;  %v1575_v9 = vpop.f32.mrb[15].mxu0  ;;  %v513_v13 = vmul.f32 %v2507_v3, %v2414_v47 }
 0x250   :  { %v1326_v10 = vpop.f32.mrb[7].mxu1 }
 0x251   :  { %v2509_v11 = vadd.f32 %v498_v6, %v409_v5  ;;  %v1327_v12 = vadd.f32 %v1326_v10, %v1325_v8  ;;  %v530_v26 = vmul.f32 %v513_v13, %v513_v13  ;;  %v517_v35 = vadd.f32 %v513_v13, %v512_v19  ;;  %v796_v19 = vld [vmem:[#allocation11 + $0x100] sm:$0xff] }
 0x253   :  { %v414_v14 = vadd.f32 %v1327_v12, %v1261_v43  ;;  %v503_v15 = vpop.f32.mrb[16].mxu0  ;;  %v514_v20 = vmul.f32 %v2509_v11, %v2421_v52  ;;  %v534_v40 = vadd.f32 %v530_v26, %v529_v34  ;;  %v765_v26 = vld [vmem:[#allocation11 + $0x8] sm:$0xff]  ;;  %v798_v34 = vld [vmem:[#allocation11 + $0x110] sm:$0xff] }
 0x254   :  { %v1328_v16 = vpop.f32.mrb[8].mxu1  ;;  %v1578_v17 = vpop.f32.mrb[17].mxu0 }
 0x255   :  { %v2517_v22 = vadd.f32 %v503_v15, %v414_v14  ;;  %v1329_v23 = vpop.f32.mrb[9].mxu1  ;;  %v531_v37 = vmul.f32 %v514_v20, %v514_v20  ;;  %v518_v41 = vadd.f32 %v517_v35, %v514_v20  ;;  %v780_v15 = vld [vmem:[#allocation11 + $0x80] sm:$0xff]  ;;  %v797_v20 = vld [vmem:[#allocation11 + $0x108] sm:$0xff]  ;;  %v799_v35 = vld [vmem:[#allocation11 + $0x118] sm:$0xff] }
 0x256   :  { %v1330_v25 = vadd.f32 %v1329_v23, %v1328_v16  ;;  %v781_v16 = vld [vmem:[#allocation11 + $0x88] sm:$0xff]  ;;  %v764_v23 = vld [vmem:[#allocation11] sm:$0xff] }
 0x257   :  { %v515_v28 = vmul.f32 %v2517_v22, %v2427_v57  ;;  %v508_v29 = vpop.f32.mrb[18].mxu0  ;;  %v535_v48 = vadd.f32 %v534_v40, %v531_v37  ;;  %v1897_v17 = vpack.c.bf16 %v781_v16, %v780_v15  ;;  %v766_v37 = vld [vmem:[#allocation11 + $0x10] sm:$0xff]  ;;  %v1933_v40 = vpack.c.bf16 %v799_v35, %v798_v34  ;;  %v804_v15 = vld [vmem:[#allocation11 + $0x140] sm:$0xff]  ;;  %v805_v16 = vld [vmem:[#allocation11 + $0x148] sm:$0xff] }
 0x258   :  { %v419_v31 = vadd.f32 %v1330_v25, %v1261_v43  ;;  %v1581_v32 = vpop.f32.mrb[19].mxu0  ;;  %v1930_v25 = vpack.c.bf16 %v797_v20, %v796_v19  ;;  %v1942_v19 = vpack.c.bf16 %v805_v16, %v804_v15  ;;  %v773_v20 = vld [vmem:[#allocation11 + $0x48] sm:$0xff]  ;;  %v775_v35 = vld [vmem:[#allocation11 + $0x58] sm:$0xff] }
 0x259   :  { %v532_v44 = vmul.f32 %v515_v28, %v515_v28  ;;  %v519_v49 = vadd.f32 %v518_v41, %v515_v28  ;;  %1898 = vmatprep.subr.bf16.mxu1 %v1897_v17  ;;  %v1899_v28 = vpack.c.bf16 %v765_v26, %v764_v23  ;;  %v767_v41 = vld [vmem:[#allocation11 + $0x18] sm:$0xff]  ;;  %v772_v17 = vld [vmem:[#allocation11 + $0x40] sm:$0xff] }
 0x25a   :  { %v2521_v38 = vadd.f32 %v508_v29, %v419_v31  ;;  %v782_v29 = vld [vmem:[#allocation11 + $0x90] sm:$0xff]  ;;  %v783_v31 = vld [vmem:[#allocation11 + $0x98] sm:$0xff]  ;;  %v1915_v23 = vpack.c.bf16 %v773_v20, %v772_v17 }
 0x25b   :  { %v536_v55 = vadd.f32 %v535_v48, %v532_v44  ;;  %v1901_v32 = vpack.c.bf16 %v783_v31, %v782_v29  ;;  %v1903_v44 = vpack.c.bf16 %v767_v41, %v766_v37  ;;  %v785_v48 = vld [vmem:[#allocation11 + $0xa8] sm:$0xff]  ;;  %v791_v26 = vld [vmem:[#allocation11 + $0xd8] sm:$0xff]  ;;  %v806_v29 = vld [vmem:[#allocation11 + $0x150] sm:$0xff] }
 0x25c   :  { %v516_v45 = vmul.f32 %v2521_v38, %v2434_v63  ;;  %v807_v31 = vld [vmem:[#allocation11 + $0x158] sm:$0xff]  ;;  %v793_v41 = vld [vmem:[#allocation11 + $0xe8] sm:$0xff] }
 0x25d   :  { %v1945_v34 = vpack.c.bf16 %v807_v31, %v806_v29  ;;  %v709_v29 = vld [vmem:[%s2662_s7] sm:$0x1] }
 0x25e   :  { %v521_v50 = vsel %vm520_vm1, %v516_v45, 0.0  ;;  %v533_v53 = vmul.f32 %v516_v45, %v516_v45  ;;  %v784_v45 = vld [vmem:[#allocation11 + $0xa0] sm:$0xff] }
 0x25f   :  { %v522_v43 = vadd.f32 %v521_v50, %v519_v49  ;;  %v1905_v49 = vpack.c.bf16 %v785_v48, %v784_v45  ;;  %v800_v50 = vld [vmem:[#allocation11 + $0x120] sm:$0xff]  ;;  %v809_v48 = vld [vmem:[#allocation11 + $0x168] sm:$0xff] }
 0x260   :  { %v537_v58 = vsel %vm520_vm1, %v533_v53, 0.0  ;;  %v801_v53 = vld [vmem:[#allocation11 + $0x128] sm:$0xff]  ;;  %v808_v45 = vld [vmem:[#allocation11 + $0x160] sm:$0xff] }
 0x261   :  { %v523_v59 = vrot.slane %v522_v43, 4  ;;  %v538_v60 = vadd.f32 %v537_v58, %v536_v55  ;;  %v768_v55 = vld [vmem:[#allocation11 + $0x20] sm:$0xff]  ;;  %v769_v58 = vld [vmem:[#allocation11 + $0x28] sm:$0xff] }
 0x263   :  { %v524_v61 = vadd.f32 %v523_v59, %v522_v43  ;;  %v539_v2 = vrot.slane %v538_v60, 4  ;;  %v1936_v43 = vpack.c.bf16 %v801_v53, %v800_v50  ;;  %v1907_v59 = vpack.c.bf16 %v769_v58, %v768_v55  ;;  %v777_v53 = vld [vmem:[#allocation11 + $0x68] sm:$0xff]  ;;  %v795_v58 = vld [vmem:[#allocation11 + $0xf8] sm:$0xff] }
 0x264   :  { %v1948_v50 = vpack.c.bf16 %v809_v48, %v808_v45 }
 0x265   :  { %v525_v4 = vrot.slane %v524_v61, 2  ;;  %v540_v5 = vadd.f32 %v539_v2, %v538_v60  ;;  %v786_v60 = vld [vmem:[#allocation11 + $0xb0] sm:$0xff] }
 0x267   :  { %v526_v6 = vadd.f32 %v525_v4, %v524_v61  ;;  %v541_v8 = vrot.slane %v540_v5, 2  ;;  %v787_v61 = vld [vmem:[#allocation11 + $0xb8] sm:$0xff]  ;;  %v802_v4 = vld [vmem:[#allocation11 + $0x130] sm:$0xff] }
 0x268   :  { %v1909_v2 = vpack.c.bf16 %v787_v61, %v786_v60  ;;  %v811_v61 = vld [vmem:[#allocation11 + $0x178] sm:$0xff] }
 0x269   :  { %v527_v9 = vrot.slane %v526_v6, 1  ;;  %v542_v10 = vadd.f32 %v541_v8, %v540_v5  ;;  %v803_v5 = vld [vmem:[#allocation11 + $0x138] sm:$0xff] }
 0x26a   :  { %v1939_v8 = vpack.c.bf16 %v803_v5, %v802_v4  ;;  %v779_v4 = vld [vmem:[#allocation11 + $0x78] sm:$0xff] }
 0x26b   :  { %v528_v12 = vadd.f32 %v527_v9, %v526_v6  ;;  %v543_v13 = vrot.slane %v542_v10, 1  ;;  %v770_v6 = vld [vmem:[#allocation11 + $0x30] sm:$0xff]  ;;  %v771_v9 = vld [vmem:[#allocation11 + $0x38] sm:$0xff] }
 0x26d   :  { %1615 = vmatmul.mubr.f32.vlgmr.msra.gmra.mrb[10].mxu1 %v528_v12  ;;  %v544_v14 = vadd.f32 %v543_v13, %v542_v10  ;;  %v1911_v10 = vpack.c.bf16 %v771_v9, %v770_v6  ;;  %v788_v12 = vld [vmem:[#allocation11 + $0xc0] sm:$0xff]  ;;  %v789_v13 = vld [vmem:[#allocation11 + $0xc8] sm:$0xff] }
 0x26e   :  { %1900 = vmatpush3.bf16.msra.mxu1 %v1899_v28 }
 0x26f   :  { %1650 = vmatmul.mubr.f32.vlgmr.msra.gmra.mrb[20].mxu0 %v544_v14  ;;  %1902 = vmatprep.subr.bf16.mxu1 %v1901_v32  ;;  %v1913_v14 = vpack.c.bf16 %v789_v13, %v788_v12  ;;  %v774_v32 = vld [vmem:[#allocation11 + $0x50] sm:$0xff] }
 0x270   :  { %1684 = vmatprep.mubr.msk.f32.mxu0 %vm2190_vm0, %v2191_v1  ;;  %1931 = vmatpush3.bf16.msra.mxu0 %v1930_v25  ;;  %v790_v25 = vld [vmem:[#allocation11 + $0xd0] sm:$0xff]  ;;  %v1919_v37 = vpack.c.bf16 %v775_v35, %v774_v32 }
 0x271   :  { %1932 = vmatprep.subr.bf16.mxu0 %v2189_v0  ;;  %v1917_v28 = vpack.c.bf16 %v791_v26, %v790_v25 }
 0x272   :  { %1904 = vmatpush3.bf16.msra.mxu1 %v1903_v44 }
 0x273   :  { %1906 = vmatprep.subr.bf16.mxu1 %v1905_v49  ;;  %v776_v49 = vld [vmem:[#allocation11 + $0x60] sm:$0xff] }
 0x274   :  { %1934 = vmatpush3.bf16.msra.mxu0 %v1933_v40  ;;  %v792_v40 = vld [vmem:[#allocation11 + $0xe0] sm:$0xff]  ;;  %v1923_v55 = vpack.c.bf16 %v777_v53, %v776_v49 }
 0x275   :  { %1935 = vmatprep.subr.bf16.mxu0 %v2189_v0  ;;  %v1921_v44 = vpack.c.bf16 %v793_v41, %v792_v40 }
 0x276   :  { %1908 = vmatpush3.bf16.msra.mxu1 %v1907_v59  ;;  %v810_v59 = vld [vmem:[#allocation11 + $0x170] sm:$0xff] }
 0x277   :  { %1910 = vmatprep.subr.bf16.mxu1 %v1909_v2  ;;  %v778_v2 = vld [vmem:[#allocation11 + $0x70] sm:$0xff]  ;;  %v1951_v5 = vpack.c.bf16 %v811_v61, %v810_v59 }
 0x278   :  { %1937 = vmatpush3.bf16.msra.mxu0 %v1936_v43  ;;  %v794_v43 = vld [vmem:[#allocation11 + $0xf0] sm:$0xff]  ;;  %v1927_v6 = vpack.c.bf16 %v779_v4, %v778_v2 }
 0x279   :  { %1938 = vmatprep.subr.bf16.mxu0 %v2189_v0  ;;  %v1925_v60 = vpack.c.bf16 %v795_v58, %v794_v43 }
 0x27a   :  { %1912 = vmatpush3.bf16.msra.mxu1 %v1911_v10 }
 0x27b   :  { %1914 = vmatprep.subr.bf16.mxu1 %v1913_v14 }
 0x27c   :  { %1940 = vmatpush3.bf16.msra.mxu0 %v1939_v8 }
 0x27d   :  { %1941 = vmatprep.subr.bf16.mxu0 %v2189_v0 }
 0x27e   :  { %1916 = vmatpush3.bf16.msra.mxu1 %v1915_v23  ;;  %v705_v23 = vld [vmem:[%s2661_s6] sm:$0x1] }
 0x27f   :  { %1918 = vmatprep.subr.bf16.mxu1 %v1917_v28 }
 0x280   :  { %1943 = vmatpush3.bf16.msra.mxu0 %v1942_v19  ;;  %v713_v19 = vlaneseq }
 0x281   :  { %1944 = vmatprep.subr.bf16.mxu0 %v2189_v0 }
 0x282   :  { %1920 = vmatpush3.bf16.msra.mxu1 %v1919_v37  ;;  %v714_v20 = vshrl.u32 %v713_v19, 7 }
 0x283   :  { %1922 = vmatprep.subr.bf16.mxu1 %v1921_v44 }
 0x284   :  { %1946 = vmatpush3.bf16.msra.mxu0 %v1945_v34  ;;  %v2541_v25 = vsub.s32 0, %v714_v20 }
 0x285   :  { %1947 = vmatprep.subr.bf16.mxu0 %v2189_v0 }
 0x286   :  { %1924 = vmatpush3.bf16.msra.mxu1 %v1923_v55 }
 0x287   :  { %1926 = vmatprep.subr.bf16.mxu1 %v1925_v60 }
 0x288   :  { %1949 = vmatpush3.bf16.msra.mxu0 %v1948_v50 }
 0x289   :  { %1950 = vmatprep.subr.bf16.mxu0 %v2189_v0 }
 0x28a   :  { %1928 = vmatpush3.bf16.msra.mxu1 %v1927_v6 }
 0x28b   :  { %1953 = vmatprep.subr.bf16.mxu1 %v2189_v0 }
 0x28c   :  { %1952 = vmatpush3.bf16.msra.mxu0 %v1951_v5 }
 0x28d   :  { %1977 = vmatprep.subr.bf16.mxu0 %v2189_v0 }
 0x340   :  { %v627_v8 = vpop.f32.mrb[10].mxu1 }
 0x341   :  { %v631_v9 = vmul.f32 0.001953125, %v627_v8  ;;  %v1616_v10 = vpop.f32.mrb[11].mxu1 }
 0x342   :  { %v698_v12 = vpop.f32.mrb[20].mxu0 }
 0x343   :  { %v703_v13 = vmul.f32 %v631_v9, %v631_v9  ;;  %v702_v14 = vmul.f32 0.001953125, %v698_v12  ;;  %v1651_v15 = vpop.f32.mrb[21].mxu0 }
 0x345   :  { %v704_v16 = vsub.f32 %v702_v14, %v703_v13 }
 0x347   :  { %v706_v17 = vadd.f32 1e-05, %v704_v16 }
 0x349   :  { %2013 = vrsqrt.f32 %v706_v17 }
 0x353   :  { %v2014_v26 = vpop.eup %2013 }
 0x354   :  { %v708_v28 = vmul.f32 %v2014_v26, %v705_v23 }
 0x356   :  { %v710_v31 = vmul.f32 %v708_v28, %v631_v9  ;;  %v716_v32 = vrot.slane %v708_v28, %v2541_v25 }
 0x358   :  { %v711_v34 = vsub.f32 %v709_v29, %v710_v31  ;;  %v718_v35 = vmul.f32 %v716_v32, %v2505_v54  ;;  %v719_v37 = vmul.f32 %v716_v32, %v2507_v3  ;;  %v720_v40 = vmul.f32 %v716_v32, %v2509_v11 }
 0x359   :  { %v721_v41 = vmul.f32 %v716_v32, %v2517_v22  ;;  %v722_v45 = vmul.f32 %v716_v32, %v2521_v38 }
 0x35a   :  { %v727_v44 = vrot.slane %v711_v34, %v2541_v25 }
 0x35c   :  { %v729_v48 = vadd.f32 %v727_v44, %v718_v35  ;;  %v730_v49 = vadd.f32 %v727_v44, %v719_v37  ;;  %v731_v50 = vadd.f32 %v727_v44, %v720_v40  ;;  %v732_v53 = vadd.f32 %v727_v44, %v721_v41 }
 0x35d   :  { %v733_v55 = vadd.f32 %v727_v44, %v722_v45 }
 0x35e   :  { %v734_v43 = vmax.f32 %v729_v48, 0.0  ;;  %v735_v58 = vmax.f32 %v730_v49, 0.0  ;;  %v736_v59 = vmax.f32 %v731_v50, 0.0  ;;  %v737_v60 = vmax.f32 %v732_v53, 0.0 }
 0x35f   :  { %v738_v54 = vmax.f32 %v733_v55, 0.0 }
 0x360   :  { %v739_v3 = vmul.f32 %v734_v43, %v2409_v42  ;;  %v740_v11 = vmul.f32 %v735_v58, %v2414_v47  ;;  %v741_v22 = vmul.f32 %v736_v59, %v2421_v52  ;;  %v742_v61 = vmul.f32 %v737_v60, %v2427_v57 }
 0x361   :  { %v743_v38 = vmul.f32 %v738_v54, %v2434_v63 }
 0x362   :  { %744 = vst [vmem:[#allocation2 + $0x1] sm:$0xff] %v739_v3  ;;  %745 = vst [vmem:[#allocation2 + $0x9] sm:$0xff] %v740_v11  ;;  %883 = vmatprep.mubr.f32.mxu1 %v739_v3 }
 0x363   :  { %746 = vst [vmem:[#allocation2 + $0x11] sm:$0xff] %v741_v22  ;;  %747 = vst [vmem:[#allocation2 + $0x19] sm:$0xff] %v742_v61 }
 0x364   :  { %748 = vst [vmem:[#allocation2 + $0x21] sm:$0xf] %v743_v38 }
 0x369   :  { %v759_v2 = vld [vmem:[#allocation2 + $0x2] sm:$0xff] }
 0x36a   :  { %v749_v4 = vld [vmem:[#allocation2] sm:$0xff]  ;;  %1685 = vmatmul.mubr.f32.vlgmr.msra.gmra.mrb[22].mxu0 %v759_v2  ;;  %v760_v5 = vld [vmem:[#allocation2 + $0xa] sm:$0xff]  ;;  %v761_v8 = vld [vmem:[#allocation2 + $0x12] sm:$0xff] }
 0x36b   :  { %884 = vmatmul.mubr.f32.vlgmr.msra.gmra.mrb[12].mxu1 %v749_v4  ;;  %1687 = vmatprep.mubr.msk.f32.mxu0 %vm2190_vm0, %v2191_v1  ;;  %v750_v6 = vld [vmem:[#allocation2 + $0x8] sm:$0xff]  ;;  %v751_v9 = vld [vmem:[#allocation2 + $0x10] sm:$0xff]  ;;  %v752_v10 = vld [vmem:[#allocation2 + $0x18] sm:$0xff] }
 0x36c   :  { %888 = vmatprep.mubr.f32.mxu1 %v740_v11  ;;  %1955 = vmatpush3.bf16.msra.mxu1 %v2455_v18  ;;  %v763_v12 = vld [vmem:[#allocation2 + $0x22] sm:$0xf] }
 0x36d   :  { %1979 = vmatpush3.bf16.msra.mxu0 %v2455_v18  ;;  %1956 = vmatprep.subr.bf16.mxu1 %v2189_v0  ;;  %v762_v18 = vld [vmem:[#allocation2 + $0x1a] sm:$0xff] }
 0x36e   :  { %1980 = vmatprep.subr.bf16.mxu0 %v2189_v0  ;;  %1688 = vmatmul.mubr.f32.gmra.mrb[24].mxu0 %v760_v5  ;;  %v753_v13 = vld [vmem:[#allocation2 + $0x20] sm:$0xf] }
 0x36f   :  { %889 = vmatmul.mubr.f32.gmra.mrb[14].mxu1 %v750_v6  ;;  %1690 = vmatprep.mubr.msk.f32.mxu0 %vm2190_vm0, %v2191_v1 }
 0x370   :  { %893 = vmatprep.mubr.f32.mxu1 %v741_v22  ;;  %1958 = vmatpush3.bf16.msra.mxu1 %v2461_v21 }
 0x371   :  { %1982 = vmatpush3.bf16.msra.mxu0 %v2461_v21  ;;  %1959 = vmatprep.subr.bf16.mxu1 %v2189_v0  ;;  %v758_v21 = vld [vmem:[#allocation2 + $0x21] sm:$0xf] }
 0x372   :  { %1983 = vmatprep.subr.bf16.mxu0 %v2189_v0  ;;  %1691 = vmatmul.mubr.f32.gmra.mrb[26].mxu0 %v761_v8 }
 0x373   :  { %894 = vmatmul.mubr.f32.gmra.mrb[16].mxu1 %v751_v9  ;;  %1693 = vmatprep.mubr.msk.f32.mxu0 %vm2190_vm0, %v2191_v1 }
 0x374   :  { %898 = vmatprep.mubr.f32.mxu1 %v742_v61  ;;  %1961 = vmatpush3.bf16.msra.mxu1 %v2467_v24 }
 0x375   :  { %1985 = vmatpush3.bf16.msra.mxu0 %v2467_v24  ;;  %1962 = vmatprep.subr.bf16.mxu1 %v2189_v0 }
 0x376   :  { %1986 = vmatprep.subr.bf16.mxu0 %v2189_v0  ;;  %1694 = vmatmul.mubr.f32.gmra.mrb[28].mxu0 %v762_v18 }
 0x377   :  { %899 = vmatmul.mubr.f32.gmra.mrb[18].mxu1 %v752_v10  ;;  %1696 = vmatprep.mubr.msk.f32.mxu0 %vm2190_vm0, %v2191_v1 }
 0x378   :  { %903 = vmatprep.mubr.f32.mxu1 %v758_v21  ;;  %1964 = vmatpush3.bf16.msra.mxu1 %v2473_v27 }
 0x379   :  { %1988 = vmatpush3.bf16.msra.mxu0 %v2473_v27  ;;  %1965 = vmatprep.subr.bf16.mxu1 %v2189_v0 }
 0x37a   :  { %1989 = vmatprep.subr.bf16.mxu0 %v2189_v0  ;;  %1697 = vmatmul.mubr.f32.gmra.mrb[30].mxu0 %v763_v12 }
 0x37b   :  { %904 = vmatmul.mubr.f32.gmra.mrb[20].mxu1 %v753_v13  ;;  %1766 = vmatprep.mubr.msk.f32.mxu0 %vm2190_vm0, %v2191_v1 }
 0x37c   :  { %1731 = vmatprep.mubr.msk.f32.mxu1 %vm2190_vm0, %v2191_v1  ;;  %1967 = vmatpush3.bf16.msra.mxu1 %v2479_v30 }
 0x37d   :  { %1991 = vmatpush3.bf16.msra.mxu0 %v2479_v30  ;;  %1968 = vmatprep.subr.bf16.mxu1 %v2189_v0  ;;  %v1262_v30 = vld [vmem:[%s2664_s9] ss:$0 sm:$0xff] }
 0x37e   :  { %1992 = vmatprep.subr.bf16.mxu0 %v2189_v0 }
 0x380   :  { %1970 = vmatpush3.bf16.msra.mxu1 %v2485_v33 }
 0x381   :  { %1994 = vmatpush3.bf16.msra.mxu0 %v2485_v33  ;;  %1971 = vmatprep.subr.bf16.mxu1 %v2189_v0 }
 0x382   :  { %1995 = vmatprep.subr.bf16.mxu0 %v2189_v0 }
 0x384   :  { %1973 = vmatpush3.bf16.msra.mxu1 %v2491_v36 }
 0x385   :  { %1997 = vmatpush3.bf16.msra.mxu0 %v2491_v36  ;;  %1974 = vmatprep.subr.bf16.mxu1 %v2189_v0 }
 0x386   :  { %1998 = vmatprep.subr.bf16.mxu0 %v2189_v0 }
 0x388   :  { %1976 = vmatpush3.bf16.msra.mxu1 %v2497_v39 }
 0x389   :  { %2000 = vmatpush3.bf16.msra.mxu0 %v2497_v39 }
 0x43d   :  { %v975_v1 = vpop.f32.mrb[22].mxu0 }
 0x43e   :  { %v1418_v24 = vpop.f32.mrb[12].mxu1  ;;  %v1686_v27 = vpop.f32.mrb[23].mxu0 }
 0x43f   :  { %v1419_v33 = vpop.f32.mrb[13].mxu1 }
 0x440   :  { %v1420_v14 = vadd.f32 %v1419_v33, %v1418_v24 }
 0x441   :  { %v980_v16 = vpop.f32.mrb[24].mxu0 }
 0x442   :  { %v886_v15 = vadd.f32 %v1420_v14, %v1262_v30  ;;  %v1421_v36 = vpop.f32.mrb[14].mxu1  ;;  %v1689_v17 = vpop.f32.mrb[25].mxu0 }
 0x443   :  { %v1422_v19 = vpop.f32.mrb[15].mxu1 }
 0x444   :  { %v2603_v20 = vadd.f32 %v975_v1, %v886_v15  ;;  %v1423_v0 = vadd.f32 %v1422_v19, %v1421_v36 }
 0x445   :  { %v985_v26 = vpop.f32.mrb[26].mxu0 }
 0x446   :  { %v891_v23 = vadd.f32 %v1423_v0, %v1262_v30  ;;  %v1424_v39 = vpop.f32.mrb[16].mxu1  ;;  %v1692_v28 = vpop.f32.mrb[27].mxu0  ;;  %v999_v55 = vmul.f32 %v2603_v20, %v2409_v42 }
 0x447   :  { %v1425_v29 = vpop.f32.mrb[17].mxu1 }
 0x448   :  { %v2605_v31 = vadd.f32 %v980_v16, %v891_v23  ;;  %v1426_v32 = vadd.f32 %v1425_v29, %v1424_v39  ;;  %v1015_v61 = vmul.f32 %v999_v55, %v999_v55 }
 0x449   :  { %v990_v35 = vpop.f32.mrb[28].mxu0 }
 0x44a   :  { %v896_v34 = vadd.f32 %v1426_v32, %v1262_v30  ;;  %v1427_v37 = vpop.f32.mrb[18].mxu1  ;;  %v1695_v40 = vpop.f32.mrb[29].mxu0  ;;  %v1000_v48 = vmul.f32 %v2605_v31, %v2414_v47 }
 0x44b   :  { %v1428_v41 = vpop.f32.mrb[19].mxu1 }
 0x44c   :  { %v2607_v44 = vadd.f32 %v985_v26, %v896_v34  ;;  %v1429_v45 = vadd.f32 %v1428_v41, %v1427_v37  ;;  %v1016_v3 = vmul.f32 %v1000_v48, %v1000_v48  ;;  %v1004_v38 = vadd.f32 %v1000_v48, %v999_v55  ;;  %v1191_v48 = vld [vmem:[%s2665_s10] sm:$0x1]  ;;  %s2192_s10 = smov [#allocation14]  }
 0x44d   :  { %v995_v50 = vpop.f32.mrb[30].mxu0 }
 0x44e   :  { %v901_v49 = vadd.f32 %v1429_v45, %v1262_v30  ;;  %v1430_v53 = vpop.f32.mrb[20].mxu1  ;;  %v1001_v43 = vmul.f32 %v2607_v44, %v2421_v52  ;;  %v1698_v58 = vpop.f32.mrb[31].mxu0  ;;  %v1020_v5 = vadd.f32 %v1016_v3, %v1015_v61 }
 0x44f   :  { %v1431_v59 = vpop.f32.mrb[21].mxu1 }
 0x450   :  { %v991_v60 = vadd.f32 %v990_v35, %v901_v49  ;;  %v1432_v54 = vadd.f32 %v1431_v59, %v1430_v53  ;;  %v1017_v2 = vmul.f32 %v1001_v43, %v1001_v43  ;;  %v1005_v6 = vadd.f32 %v1004_v38, %v1001_v43  ;;  %v1195_v53 = vld [vmem:[%s2666_s11] sm:$0x1]  ;;  %s1245_s11 = sshll.u32 %s2192_s10, 4  ;;  %s1246_s11 = int_to_ptr.vmem [resolvable:$true] %s1245_s11 }
 0x451   :  { %s2149_s22 = scalar_lea.vmem %s1246_s11, 640  ;;  %p2154_p7 = scmp.lt.s32.totalorder %s1246_s11, %s1246_s11 }
 0x452   :  { %v1002_v11 = vmul.f32 %v991_v60, %v2427_v57  ;;  %v906_v22 = vadd.f32 %v1432_v54, %v1262_v30  ;;  %v1021_v18 = vadd.f32 %v1020_v5, %v1017_v2  ;;  %p2150_p6 = scmp.ne.s32.totalorder %s1246_s11, %s2149_s22  ;;  %p2155_p8 = scmp.lt.s32.totalorder %s2149_s22, %s2149_s22 }
 0x454   :  { %v996_v4 = vadd.f32 %v995_v50, %v906_v22  ;;  %v1018_v8 = vmul.f32 %v1002_v11, %v1002_v11  ;;  %v1006_v10 = vadd.f32 %v1005_v6, %v1002_v11  ;;  %p2156_p9 = por %p2155_p8, %p2154_p7 }
 0x456   :  { %v1003_v9 = vmul.f32 %v996_v4, %v2434_v63  ;;  %v1022_v13 = vadd.f32 %v1021_v18, %v1018_v8  ;;  %p2157_p10 = pnand %p2156_p9, %p2150_p6 }
 0x458   :  { %v1007_v21 = vsel %vm520_vm1, %v1003_v9, 0.0  ;;  %v1019_v12 = vmul.f32 %v1003_v9, %v1003_v9 }
 0x459   :  { %v1008_v1 = vadd.f32 %v1007_v21, %v1006_v10 }
 0x45a   :  { %v1023_v24 = vsel %vm520_vm1, %v1019_v12, 0.0 }
 0x45b   :  { %v1009_v27 = vrot.slane %v1008_v1, 4  ;;  %v1024_v30 = vadd.f32 %v1023_v24, %v1022_v13 }
 0x45d   :  { %v1010_v33 = vadd.f32 %v1009_v27, %v1008_v1  ;;  %v1025_v14 = vrot.slane %v1024_v30, 4 }
 0x45f   :  { %v1011_v15 = vrot.slane %v1010_v33, 2  ;;  %v1026_v16 = vadd.f32 %v1025_v14, %v1024_v30 }
 0x461   :  { %v1012_v36 = vadd.f32 %v1011_v15, %v1010_v33  ;;  %v1027_v17 = vrot.slane %v1026_v16, 2 }
 0x463   :  { %v1013_v19 = vrot.slane %v1012_v36, 1  ;;  %v1028_v0 = vadd.f32 %v1027_v17, %v1026_v16 }
 0x465   :  { %v1014_v23 = vadd.f32 %v1013_v19, %v1012_v36  ;;  %v1029_v26 = vrot.slane %v1028_v0, 1 }
 0x467   :  { %1732 = vmatmul.mubr.f32.vlgmr.msra.gmra.mrb[22].mxu1 %v1014_v23  ;;  %v1030_v39 = vadd.f32 %v1029_v26, %v1028_v0 }
 0x469   :  { %1767 = vmatmul.mubr.f32.vlgmr.msra.gmra.mrb[32].mxu0 %v1030_v39 }
 0x53a   :  { %v1113_v28 = vpop.f32.mrb[22].mxu1 }
 0x53b   :  { %v1117_v29 = vmul.f32 0.001953125, %v1113_v28  ;;  %v1733_v32 = vpop.f32.mrb[23].mxu1 }
 0x53c   :  { %v1184_v34 = vpop.f32.mrb[32].mxu0 }
 0x53d   :  { %v1189_v35 = vmul.f32 %v1117_v29, %v1117_v29  ;;  %v1188_v37 = vmul.f32 0.001953125, %v1184_v34  ;;  %v1768_v40 = vpop.f32.mrb[33].mxu0 }
 0x53f   :  { %v1190_v41 = vsub.f32 %v1188_v37, %v1189_v35 }
 0x541   :  { %v1192_v45 = vadd.f32 1e-05, %v1190_v41 }
 0x543   :  { %2015 = vrsqrt.f32 %v1192_v45 }
 0x54d   :  { %v2016_v49 = vpop.eup %2015 }
 0x54e   :  { %v1194_v50 = vmul.f32 %v2016_v49, %v1191_v48 }
 0x550   :  { %v1196_v55 = vmul.f32 %v1194_v50, %v1117_v29  ;;  %v1202_v43 = vrot.slane %v1194_v50, %v2541_v25 }
 0x552   :  { %v1197_v58 = vsub.f32 %v1195_v53, %v1196_v55  ;;  %v1204_v59 = vmul.f32 %v1202_v43, %v2603_v20  ;;  %v1205_v3 = vmul.f32 %v1202_v43, %v2605_v31  ;;  %v1206_v11 = vmul.f32 %v1202_v43, %v2607_v44 }
 0x553   :  { %v1207_v22 = vmul.f32 %v1202_v43, %v991_v60  ;;  %v1208_v61 = vmul.f32 %v1202_v43, %v996_v4 }
 0x554   :  { %v1213_v54 = vrot.slane %v1197_v58, %v2541_v25 }
 0x556   :  { %v1215_v38 = vadd.f32 %v1213_v54, %v1204_v59  ;;  %v1216_v2 = vadd.f32 %v1213_v54, %v1205_v3  ;;  %v1217_v5 = vadd.f32 %v1213_v54, %v1206_v11  ;;  %v1218_v6 = vadd.f32 %v1213_v54, %v1207_v22 }
 0x557   :  { %v1219_v8 = vadd.f32 %v1213_v54, %v1208_v61 }
 0x558   :  { %v1220_v9 = vmax.f32 %v1215_v38, 0.0  ;;  %v1221_v18 = vmax.f32 %v1216_v2, 0.0  ;;  %v1222_v10 = vmax.f32 %v1217_v5, 0.0  ;;  %v1223_v21 = vmax.f32 %v1218_v6, 0.0 }
 0x559   :  { %v1224_v12 = vmax.f32 %v1219_v8, 0.0 }
 0x55a   :  { %v1225_v20 = vmul.f32 %v1220_v9, %v2409_v42  ;;  %v1226_v25 = vmul.f32 %v1221_v18, %v2414_v47  ;;  %v1227_v31 = vmul.f32 %v1222_v10, %v2421_v52  ;;  %v1228_v44 = vmul.f32 %v1223_v21, %v2427_v57 }
 0x55b   :  { %v1229_v60 = vmul.f32 %v1224_v12, %v2434_v63 }
 0x55c   :  { %v1230_v4 = vadd.f32 %v1225_v20, %v2412_v46  ;;  %v1231_v13 = vadd.f32 %v1226_v25, %v2419_v51  ;;  %v1232_v1 = vadd.f32 %v1227_v31, %v2425_v56  ;;  %v1233_v24 = vadd.f32 %v1228_v44, %v2432_v62 }
 0x55d   :  { %v1234_v42 = vadd.f32 %v1229_v60, %v2441_v7 }
 0x55e   :  { %1235 = vst [vmem:[#allocation14] sm:$0xff] %v1230_v4  ;;  %1236 = vst [vmem:[#allocation14 + $0x8] sm:$0xff] %v1231_v13 }
 0x55f   :  { %1237 = vst [vmem:[#allocation14 + $0x10] sm:$0xff] %v1232_v1  ;;  %1238 = vst [vmem:[#allocation14 + $0x18] sm:$0xff] %v1233_v24 }
 0x560   :  { %1239 = vst [vmem:[#allocation14 + $0x20] sm:$0xf] %v1234_v42 }
 0x561   :  { %2160 = shalt.err (!%p2157_p10)
}
 0x562   :  { %s2161_s24 = scalar_lea.hbm %s2668_s13, 640 }
 0x563   :  { %p2162_p11 = scmp.ne.s32.totalorder %s2668_s13, %s2161_s24  ;;  %p2165_p12 = scmp.lt.u32.totalorder %s2161_s24, %s2668_s13 }
 0x565   :  { %p2167_p13 = pnand %p2165_p12, %p2162_p11 }
 0x567   :  { %2170 = shalt.err (!%p2167_p13)
}
 0x568   :  { %1251 = dma.vmem_to_hbm [thread:$0]  %s1246_s11, 640, %s2668_s13, [#allocation5], %s2183_s20, %s2183_s20, %s2184_s21  }
 0x569   :  { %2179 = dma.done.wait [#allocation5], 640  }
 0x56a   :  { %2180 = vsyncadd [#allocation5], 4294966656 }
 0x56b   :  { %1255 = vsyncpa [#allocation4], 1 }
 0x56c   :  { %1256 = vsyncpa [#allocation7], 1 }
 0x56d   :  { %1257 = vsyncpa [#allocation10], 1 }
 0x56e   :  { %1258 = vsyncpa [#allocation13], 1 }
 0x56f   :  { %1259 = vsyncpa [#allocation5], 1 }

</bundles_post_ra>
